<compile_context>
chip_gen: v5e
topology: v5e:2x2
jax: 0.10.0
libtpu: 0.0.40
codegen_flags: <defaults>
</compile_context>

<pallas_src>
import math
import functools

import numpy as np
import jax
import jax.numpy as jnp
from jax import lax
from jax.experimental import pallas as pl
from jax.experimental.pallas import tpu as pltpu


# ----------------------------------------------------------------------------
# Pallas kernel: multi-head attention for a block of agents (one grid step).
# ----------------------------------------------------------------------------
def _sparse_mha_kernel(scal_ref, feat_ref, pos_ref, post_ref,
                       wqkv_ref, bqkv_ref, wo_ref, bo_ref, out_ref,
                       *, num_heads):
    # scal_ref : (2,) f32 SMEM -> [max_distance**2, time_window]
    # feat_ref : [AB, T, D] bf16   pos_ref : [AB, T, 2] f32   post_ref : [AB, 2, T] f32
    # wqkv_ref : [D, 3D] bf16 (pre-transposed, 1/sqrt(hd) folded into Q columns)
    # bqkv_ref : [1, 3D] f32       wo_ref : [D, D] bf16       bo_ref : [1, D] f32
    # out_ref  : [AB, T, D] f32
    AB, T, D = feat_ref.shape
    H = num_heads
    hd = D // H
    B = AB * H

    maxd2 = scal_ref[0]
    tw = scal_ref[1]

    # ---- sparse additive mask rebuilt on the VPU, batched over agents ----
    ti = lax.broadcasted_iota(jnp.int32, (T, T), 0)
    tj = lax.broadcasted_iota(jnp.int32, (T, T), 1)
    band = jnp.abs(ti - tj).astype(jnp.float32) <= tw             # [T, T] once per step

    pc = pos_ref[...]                                             # [AB, T, 2]
    pr = post_ref[...]                                            # [AB, 2, T]
    dx = pc[:, :, 0:1] - pr[:, 0:1, :]                            # [AB, T, T]
    dy = pc[:, :, 1:2] - pr[:, 1:2, :]
    dist2 = dx * dx + dy * dy
    allowed = (dist2 <= maxd2) & band[None, :, :]
    add_mask = jnp.where(allowed, jnp.float32(0.0), jnp.float32(-1e30))   # [AB, T, T]

    # ---- one batched QKV projection for the whole agent sub-block (MXU) ----
    x2d = feat_ref[...].reshape(AB * T, D)                        # bf16
    qkv = jnp.dot(x2d, wqkv_ref[...],
                  preferred_element_type=jnp.float32) + bqkv_ref[...]      # [AB*T, 3D]

    # one batched minor-swap for Q, K and V together; head split via free reshapes
    qkvT = pltpu.einshape("atf->aft", qkv.reshape(AB, T, 3 * D))  # [AB, 3D, T]
    qhT = qkvT[:, :D, :].reshape(B, hd, T)                        # [B, hd, T]
    khT = qkvT[:, D:2 * D, :].reshape(B, hd, T)
    vhT = qkvT[:, 2 * D:, :].reshape(B, hd, T)
    qh = pltpu.einshape("bdt->btd", qhT)                          # [B, T, hd]

    # ---- scores + mask + softmax: one pass over all (agent, head) pairs ----
    s = jnp.einsum("bqd,bdk->bqk",
                   qh.astype(jnp.bfloat16), khT.astype(jnp.bfloat16),
                   preferred_element_type=jnp.float32)            # [B, T, T]
    s = s.reshape(AB, H, T, T) + add_mask[:, None, :, :]
    s = s - jnp.max(s, axis=-1, keepdims=True)
    p = jnp.exp(s)                                                # f32 exp (safe on v5e)
    # TODO(synk): bf16 exp on v6e/v7x (bf16 EUP ~2x transcendental throughput).
    p = p * pl.reciprocal(jnp.sum(p, axis=-1, keepdims=True), approx=True)
    p = p.reshape(B, T, T)

    # ---- context + output projection ----
    ctxT = jnp.einsum("bdk,bqk->bdq",
                      vhT.astype(jnp.bfloat16), p.astype(jnp.bfloat16),
                      preferred_element_type=jnp.float32)         # [B, hd, T]
    merged = pltpu.einshape("adt->atd", ctxT.reshape(AB, D, T))   # [AB, T, D] f32
    out = jnp.dot(merged.reshape(AB * T, D).astype(jnp.bfloat16), wo_ref[...],
                  preferred_element_type=jnp.float32) + bo_ref[...]        # [AB*T, D]
    out_ref[...] = out.reshape(AB, T, D).astype(out_ref.dtype)


# ----------------------------------------------------------------------------
# Wrapper
# ----------------------------------------------------------------------------
def _vmem_bytes_per_agent(T, D, H):
    """Rough upper bound on live VMEM bytes per agent in one grid step."""
    f32, bf16 = 4, 2
    att = (3 * H + 4) * T * T * f32            # scores / exp / probs per head + mask temps
    proj = (2 * 3 * D + 3 * D) * T * f32       # qkv, qkv^T, ctx / merged / out
    io = 2 * (T * D * (bf16 + f32) + 8 * T * f32)   # double-buffered feature/out/pos tiles
    return att + proj + io


def sparse_attention_forward(features, positions, max_distance, time_window,
                             params, num_heads, agents_per_block=None):
    A, T, D = features.shape
    assert D % num_heads == 0, "feature_dim must be divisible by head_num"
    hd = D // num_heads
    scale = 1.0 / math.sqrt(hd)

    # ---- generation-aware VMEM budget + agent sub-block size ----
    try:
        vmem_cap = int(pltpu.get_tpu_info().vmem_capacity_bytes)
    except Exception:
        vmem_cap = 64 * 1024 * 1024            # conservative (v7x per-core VMEM)
    vmem_limit = min(int(vmem_cap * 3 // 4), 112 * 1024 * 1024)

    if agents_per_block is None:
        weight_bytes = 2 * ((D * 3 * D + D * D) * 2 + (3 * D + D) * 4)
        budget = max(vmem_limit - weight_bytes - (4 << 20), vmem_limit // 4)
        ab = max(1, min(A, 8, budget // max(1, _vmem_bytes_per_agent(T, D, num_heads))))
        # keep >=2 grid steps (>=4 when possible) so "parallel" shards across v7x's 2 TCs
        target_steps = 4 if A >= 8 else 2
        ab = min(ab, max(1, A // target_steps))
    else:
        ab = max(1, min(A, agents_per_block))
    while A % ab != 0:
        ab -= 1
    AB = ab

    feat_bf = features.astype(jnp.bfloat16)                       # halve the feature DMA
    positions = positions.astype(jnp.float32)
    pos_t = jnp.transpose(positions, (0, 2, 1))                   # [A, 2, T]

    # runtime scalars -> SMEM (no dense mask ever built / DMA'd)
    scal = jnp.stack([jnp.asarray(max_distance, jnp.float32) ** 2,
                      jnp.asarray(time_window, jnp.float32)])     # (2,) f32

    # weights: pre-transposed + concatenated; 1/sqrt(hd) folded into the Q columns
    w_in = params["w_in"].astype(jnp.float32)                     # [3D, D]
    b_in = params["b_in"].astype(jnp.float32)                     # [3D]
    col_scale = jnp.concatenate([jnp.full((D,), scale, jnp.float32),
                                 jnp.ones((2 * D,), jnp.float32)])
    w_qkv = (w_in.T * col_scale[None, :]).astype(jnp.bfloat16)    # [D, 3D]
    b_qkv = (b_in * col_scale)[None, :]                           # [1, 3D] f32
    w_o = params["w_out"].astype(jnp.float32).T.astype(jnp.bfloat16)  # [D, D]
    b_o = params["b_out"].astype(jnp.float32)[None, :]            # [1, D] f32

    kernel = functools.partial(_sparse_mha_kernel, num_heads=num_heads)
    agent_block = lambda g: (g, 0, 0)
    const2 = lambda g: (0, 0)

    def build(single_buffer_weights):
        def wspec(shape):
            if single_buffer_weights:
                # constant-index blocks never change -> no need to double-buffer
                return pl.BlockSpec(shape, const2, pipeline_mode=pl.Buffered(1))
            return pl.BlockSpec(shape, const2)
        return pl.pallas_call(
            kernel,
            out_shape=jax.ShapeDtypeStruct((A, T, D), jnp.float32),
            grid=(A // AB,),
            in_specs=[
                pl.BlockSpec(memory_space=pltpu.MemorySpace.SMEM),   # scalars
                pl.BlockSpec((AB, T, D), agent_block),               # features (bf16)
                pl.BlockSpec((AB, T, 2), agent_block),               # positions
                pl.BlockSpec((AB, 2, T), agent_block),               # positions^T
                wspec((D, 3 * D)),                                   # W_qkv (Q scaled)
                wspec((1, 3 * D)),                                   # b_qkv (Q scaled)
                wspec((D, D)),                                       # W_out^T
                wspec((1, D)),                                       # b_out
            ],
            out_specs=pl.BlockSpec((AB, T, D), agent_block),
            compiler_params=pltpu.CompilerParams(
                dimension_semantics=("parallel",),
                vmem_limit_bytes=vmem_limit),
        )

    args = (scal, feat_bf, positions, pos_t, w_qkv, b_qkv, w_o, b_o)
    try:
        return build(True)(*args)
    except Exception:
        # pipeline_mode / Buffered(1) unsupported in this JAX version -> plain specs
        return build(False)(*args)


# ----------------------------------------------------------------------------
# Pure-JAX reference (mirrors torch.nn.MultiheadAttention forward with q=k=v)
# ----------------------------------------------------------------------------
def reference_forward(features, positions, max_distance, time_window,
                      params, num_heads):
    A, T, D = features.shape
    hd = D // num_heads

    diff = positions[:, :, None, :] - positions[:, None, :, :]
    dist = jnp.sqrt(jnp.sum(diff * diff, axis=-1))
    t_idx = jnp.arange(T)
    tdiff = jnp.abs(t_idx[:, None] - t_idx[None, :])
    disallowed = (dist > max_distance) | (tdiff[None] > time_window)
    add_mask = jnp.where(disallowed, jnp.float32(-1e30), jnp.float32(0.0))

    qkv = features @ params["w_in"].T + params["b_in"]               # [A, T, 3D]
    q, k, v = qkv[..., :D], qkv[..., D:2 * D], qkv[..., 2 * D:]

    def split(x):   # [A, T, D] -> [A, H, T, hd]
        return x.reshape(A, T, num_heads, hd).transpose(0, 2, 1, 3)

    q, k, v = split(q), split(k), split(v)
    s = jnp.einsum("ahid,ahjd->ahij", q, k) / math.sqrt(hd)
    s = s + add_mask[:, None]
    p = jax.nn.softmax(s, axis=-1)
    o = jnp.einsum("ahij,ahjd->ahid", p, v)
    o = o.transpose(0, 2, 1, 3).reshape(A, T, D)
    return o @ params["w_out"].T + params["b_out"]


# ----------------------------------------------------------------------------
if __name__ == "__main__":
    A, T, D, H = 4, 8, 32, 4          # agents, time steps, feature_dim, heads
    max_distance = 1.5
    time_window = 3

    key = jax.random.PRNGKey(0)
    k1, k2, k3, k4, k5, k6 = jax.random.split(key, 6)

    features = jax.random.normal(k1, (A, T, D), dtype=jnp.float32)
    positions = jax.random.uniform(k2, (A, T, 2), dtype=jnp.float32,
                                   minval=0.0, maxval=3.0)

    # deterministic synthetic parameters (same shapes as nn.MultiheadAttention)
    params = {
        "w_in": 0.1 * jax.random.normal(k3, (3 * D, D), dtype=jnp.float32),
        "b_in": 0.01 * jax.random.normal(k4, (3 * D,), dtype=jnp.float32),
        "w_out": 0.1 * jax.random.normal(k5, (D, D), dtype=jnp.float32),
        "b_out": 0.01 * jax.random.normal(k6, (D,), dtype=jnp.float32),
    }

    out = sparse_attention_forward(features, positions, max_distance,
                                   time_window, params, H)
    out = jax.block_until_ready(out)

    ref = jax.block_until_ready(
        reference_forward(features, positions, max_distance, time_window,
                          params, H))

    np.testing.assert_allclose(np.asarray(out), np.asarray(ref),
                               rtol=2e-2, atol=2e-2)
    print("KERNEL_OK")
</pallas_src>

<mosaic_0001>
module attributes {stable_mosaic.version = 11 : i64} {
  func.func @_sparse_mha_kernel(%arg0: i32, %arg1: memref<2xf32, #tpu.memory_space<smem>>, %arg2: memref<2x8x32xbf16, #tpu.memory_space<vmem>>, %arg3: memref<2x8x2xf32, #tpu.memory_space<vmem>>, %arg4: memref<2x2x8xf32, #tpu.memory_space<vmem>>, %arg5: memref<32x96xbf16, #tpu.memory_space<vmem>>, %arg6: memref<1x96xf32, #tpu.memory_space<vmem>>, %arg7: memref<32x32xbf16, #tpu.memory_space<vmem>>, %arg8: memref<1x32xf32, #tpu.memory_space<vmem>>, %arg9: memref<2x8x32xf32, #tpu.memory_space<vmem>>) attributes {dimension_semantics = [#tpu.dimension_semantics<parallel>], iteration_bounds = array<i64: 2>, scalar_prefetch = 0 : i64, scratch_operands = 0 : i64, tpu.core_type = #tpu.core_type<tc>, window_params = [{transform_indices = @transform_0, window_bounds = array<i64: 2>}, {transform_indices = @transform_1, window_bounds = array<i64: 2, 8, 32>}, {transform_indices = @transform_2, window_bounds = array<i64: 2, 8, 2>}, {transform_indices = @transform_3, window_bounds = array<i64: 2, 2, 8>}, {pipeline_mode = #tpu.pipeline_mode<synchronous>, transform_indices = @transform_4, window_bounds = array<i64: 32, 96>}, {pipeline_mode = #tpu.pipeline_mode<synchronous>, transform_indices = @transform_5, window_bounds = array<i64: 1, 96>}, {pipeline_mode = #tpu.pipeline_mode<synchronous>, transform_indices = @transform_6, window_bounds = array<i64: 32, 32>}, {pipeline_mode = #tpu.pipeline_mode<synchronous>, transform_indices = @transform_7, window_bounds = array<i64: 1, 32>}, {transform_indices = @transform_8, window_bounds = array<i64: 2, 8, 32>}]} {
    %c0 = arith.constant 0 : index
    %0 = memref.load %arg1[%c0] : memref<2xf32, #tpu.memory_space<smem>>
    %c1 = arith.constant 1 : index
    %1 = memref.load %arg1[%c1] : memref<2xf32, #tpu.memory_space<smem>>
    %2 = tpu.iota {dimensions = array<i32: 0>} : vector<8x8xi32>
    %3 = tpu.iota {dimensions = array<i32: 1>} : vector<8x8xi32>
    %4 = arith.subi %2, %3 : vector<8x8xi32>
    %5 = math.absi %4 : vector<8x8xi32>
    %6 = arith.sitofp %5 : vector<8x8xi32> to vector<8x8xf32>
    %7 = vector.broadcast %1 : f32 to vector<8x8xf32>
    %8 = arith.cmpf ole, %6, %7 : vector<8x8xf32>
    %c0_0 = arith.constant 0 : index
    %c0_1 = arith.constant 0 : index
    %c0_2 = arith.constant 0 : index
    %9 = vector.load %arg3[%c0_0, %c0_1, %c0_2] : memref<2x8x2xf32, #tpu.memory_space<vmem>>, vector<2x8x2xf32>
    %c0_3 = arith.constant 0 : index
    %c0_4 = arith.constant 0 : index
    %c0_5 = arith.constant 0 : index
    %10 = vector.load %arg4[%c0_3, %c0_4, %c0_5] : memref<2x2x8xf32, #tpu.memory_space<vmem>>, vector<2x2x8xf32>
    %11 = vector.extract_strided_slice %9 {offsets = [0, 0, 0], sizes = [2, 8, 1], strides = [1, 1, 1]} : vector<2x8x2xf32> to vector<2x8x1xf32>
    %12 = vector.extract_strided_slice %10 {offsets = [0, 0, 0], sizes = [2, 1, 8], strides = [1, 1, 1]} : vector<2x2x8xf32> to vector<2x1x8xf32>
    %13 = vector.broadcast %11 : vector<2x8x1xf32> to vector<2x8x8xf32>
    %14 = vector.broadcast %12 : vector<2x1x8xf32> to vector<2x8x8xf32>
    %15 = arith.subf %13, %14 : vector<2x8x8xf32>
    %16 = vector.extract_strided_slice %9 {offsets = [0, 0, 1], sizes = [2, 8, 1], strides = [1, 1, 1]} : vector<2x8x2xf32> to vector<2x8x1xf32>
    %17 = vector.extract_strided_slice %10 {offsets = [0, 1, 0], sizes = [2, 1, 8], strides = [1, 1, 1]} : vector<2x2x8xf32> to vector<2x1x8xf32>
    %18 = vector.broadcast %16 : vector<2x8x1xf32> to vector<2x8x8xf32>
    %19 = vector.broadcast %17 : vector<2x1x8xf32> to vector<2x8x8xf32>
    %20 = arith.subf %18, %19 : vector<2x8x8xf32>
    %21 = arith.mulf %15, %15 : vector<2x8x8xf32>
    %22 = arith.mulf %20, %20 : vector<2x8x8xf32>
    %23 = arith.addf %21, %22 : vector<2x8x8xf32>
    %24 = vector.broadcast %0 : f32 to vector<2x8x8xf32>
    %25 = arith.cmpf ole, %23, %24 : vector<2x8x8xf32>
    %26 = vector.shape_cast %8 : vector<8x8xi1> to vector<1x8x8xi1>
    %27 = vector.broadcast %26 : vector<1x8x8xi1> to vector<2x8x8xi1>
    %28 = arith.andi %25, %27 : vector<2x8x8xi1>
    %cst = arith.constant 0.000000e+00 : f32
    %cst_6 = arith.constant -1.000000e+30 : f32
    %29 = vector.broadcast %cst : f32 to vector<2x8x8xf32>
    %30 = vector.broadcast %cst_6 : f32 to vector<2x8x8xf32>
    %31 = arith.select %28, %29, %30 : vector<2x8x8xi1>, vector<2x8x8xf32>
    %c0_7 = arith.constant 0 : index
    %c0_8 = arith.constant 0 : index
    %c0_9 = arith.constant 0 : index
    %32 = vector.load %arg2[%c0_7, %c0_8, %c0_9] : memref<2x8x32xbf16, #tpu.memory_space<vmem>>, vector<2x8x32xbf16>
    %33 = vector.shape_cast %32 : vector<2x8x32xbf16> to vector<16x32xbf16>
    %c0_10 = arith.constant 0 : index
    %c0_11 = arith.constant 0 : index
    %34 = vector.load %arg5[%c0_10, %c0_11] : memref<32x96xbf16, #tpu.memory_space<vmem>>, vector<32x96xbf16>
    %cst_12 = arith.constant dense<0.000000e+00> : vector<16x96xf32>
    %35 = tpu.matmul %33, %34, %cst_12 {dimension_numbers = #tpu.dot_dimension_numbers<[1], [0], [0], [1], [0, 0, 1, 1], [], []>} : vector<16x32xbf16>, vector<32x96xbf16>, vector<16x96xf32> -> vector<16x96xf32>
    %c0_13 = arith.constant 0 : index
    %c0_14 = arith.constant 0 : index
    %36 = vector.load %arg6[%c0_13, %c0_14] : memref<1x96xf32, #tpu.memory_space<vmem>>, vector<1x96xf32>
    %37 = vector.broadcast %36 : vector<1x96xf32> to vector<16x96xf32>
    %38 = arith.addf %35, %37 : vector<16x96xf32>
    %39 = vector.shape_cast %38 : vector<16x96xf32> to vector<2x8x96xf32>
    %40 = tpu.transpose %39, [0, 2, 1] : vector<2x8x96xf32> -> vector<2x96x8xf32>
    %41 = vector.extract_strided_slice %40 {offsets = [0, 0, 0], sizes = [2, 32, 8], strides = [1, 1, 1]} : vector<2x96x8xf32> to vector<2x32x8xf32>
    %42 = vector.shape_cast %41 : vector<2x32x8xf32> to vector<8x8x8xf32>
    %43 = vector.extract_strided_slice %40 {offsets = [0, 32, 0], sizes = [2, 32, 8], strides = [1, 1, 1]} : vector<2x96x8xf32> to vector<2x32x8xf32>
    %44 = vector.shape_cast %43 : vector<2x32x8xf32> to vector<8x8x8xf32>
    %45 = vector.extract_strided_slice %40 {offsets = [0, 64, 0], sizes = [2, 32, 8], strides = [1, 1, 1]} : vector<2x96x8xf32> to vector<2x32x8xf32>
    %46 = vector.shape_cast %45 : vector<2x32x8xf32> to vector<8x8x8xf32>
    %47 = tpu.transpose %42, [0, 2, 1] : vector<8x8x8xf32> -> vector<8x8x8xf32>
    %48 = arith.truncf %47 : vector<8x8x8xf32> to vector<8x8x8xbf16>
    %49 = arith.truncf %44 : vector<8x8x8xf32> to vector<8x8x8xbf16>
    "tpu.trace_start"() <{level = 10 : i32, message = "bqd,bdk->bqk"}> : () -> ()
    %cst_15 = arith.constant dense<0.000000e+00> : vector<8x8x8xf32>
    %50 = tpu.matmul %48, %49, %cst_15 {dimension_numbers = #tpu.dot_dimension_numbers<[2], [1], [1], [2], [0, 0, 0, 1, 1, 2], [0], [0]>} : vector<8x8x8xbf16>, vector<8x8x8xbf16>, vector<8x8x8xf32> -> vector<8x8x8xf32>
    "tpu.trace_stop"() : () -> ()
    %51 = vector.shape_cast %50 : vector<8x8x8xf32> to vector<2x4x8x8xf32>
    %52 = vector.shape_cast %31 : vector<2x8x8xf32> to vector<2x1x8x8xf32>
    %53 = vector.broadcast %52 : vector<2x1x8x8xf32> to vector<2x4x8x8xf32>
    %54 = arith.addf %51, %53 : vector<2x4x8x8xf32>
    %cst_16 = arith.constant dense<0xFF800000> : vector<2x4x8xf32>
    %55 = vector.multi_reduction <maximumf>, %54, %cst_16 [3] : vector<2x4x8x8xf32> to vector<2x4x8xf32>
    %56 = vector.shape_cast %55 : vector<2x4x8xf32> to vector<2x4x8x1xf32>
    %57 = vector.broadcast %56 : vector<2x4x8x1xf32> to vector<2x4x8x8xf32>
    %58 = arith.subf %54, %57 : vector<2x4x8x8xf32>
    %59 = math.exp %58 : vector<2x4x8x8xf32>
    %cst_17 = arith.constant dense<0.000000e+00> : vector<2x4x8xf32>
    %60 = vector.multi_reduction <add>, %59, %cst_17 [3] : vector<2x4x8x8xf32> to vector<2x4x8xf32>
    %61 = vector.shape_cast %60 : vector<2x4x8xf32> to vector<2x4x8x1xf32>
    %62 = tpu.reciprocal %61 {approx = true} : vector<2x4x8x1xf32> -> vector<2x4x8x1xf32>
    %63 = vector.broadcast %62 : vector<2x4x8x1xf32> to vector<2x4x8x8xf32>
    %64 = arith.mulf %59, %63 : vector<2x4x8x8xf32>
    %65 = vector.shape_cast %64 : vector<2x4x8x8xf32> to vector<8x8x8xf32>
    %66 = arith.truncf %46 : vector<8x8x8xf32> to vector<8x8x8xbf16>
    %67 = arith.truncf %65 : vector<8x8x8xf32> to vector<8x8x8xbf16>
    "tpu.trace_start"() <{level = 10 : i32, message = "bdk,bqk->bdq"}> : () -> ()
    %cst_18 = arith.constant dense<0.000000e+00> : vector<8x8x8xf32>
    %68 = tpu.matmul %66, %67, %cst_18 {dimension_numbers = #tpu.dot_dimension_numbers<[2], [2], [1], [1], [0, 0, 0, 1, 1, 1], [0], [0]>} : vector<8x8x8xbf16>, vector<8x8x8xbf16>, vector<8x8x8xf32> -> vector<8x8x8xf32>
    "tpu.trace_stop"() : () -> ()
    %69 = vector.shape_cast %68 : vector<8x8x8xf32> to vector<2x32x8xf32>
    %70 = tpu.transpose %69, [0, 2, 1] : vector<2x32x8xf32> -> vector<2x8x32xf32>
    %71 = vector.shape_cast %70 : vector<2x8x32xf32> to vector<16x32xf32>
    %72 = arith.truncf %71 : vector<16x32xf32> to vector<16x32xbf16>
    %c0_19 = arith.constant 0 : index
    %c0_20 = arith.constant 0 : index
    %73 = vector.load %arg7[%c0_19, %c0_20] : memref<32x32xbf16, #tpu.memory_space<vmem>>, vector<32x32xbf16>
    %cst_21 = arith.constant dense<0.000000e+00> : vector<16x32xf32>
    %74 = tpu.matmul %72, %73, %cst_21 {dimension_numbers = #tpu.dot_dimension_numbers<[1], [0], [0], [1], [0, 0, 1, 1], [], []>} : vector<16x32xbf16>, vector<32x32xbf16>, vector<16x32xf32> -> vector<16x32xf32>
    %c0_22 = arith.constant 0 : index
    %c0_23 = arith.constant 0 : index
    %75 = vector.load %arg8[%c0_22, %c0_23] : memref<1x32xf32, #tpu.memory_space<vmem>>, vector<1x32xf32>
    %76 = vector.broadcast %75 : vector<1x32xf32> to vector<16x32xf32>
    %77 = arith.addf %74, %76 : vector<16x32xf32>
    %78 = vector.shape_cast %77 : vector<16x32xf32> to vector<2x8x32xf32>
    %c0_24 = arith.constant 0 : index
    %c0_25 = arith.constant 0 : index
    %c0_26 = arith.constant 0 : index
    %79 = vector.load %arg9[%c0_24, %c0_25, %c0_26] : memref<2x8x32xf32, #tpu.memory_space<vmem>>, vector<2x8x32xf32>
    tpu.vector_store %arg9[%c0_24, %c0_25, %c0_26], %78 {strides = array<i32>} : memref<2x8x32xf32, #tpu.memory_space<vmem>>, vector<2x8x32xf32>,
    return
  }
  func.func @transform_0(%arg0: i32) -> i32 {
    %c0_i32 = arith.constant 0 : i32
    %c0_i32_0 = arith.constant 0 : i32
    return %c0_i32 : i32
  }
  func.func @transform_1(%arg0: i32) -> (i32, i32, i32) {
    %c0_i32 = arith.constant 0 : i32
    %c0_i32_0 = arith.constant 0 : i32
    %c0_i32_1 = arith.constant 0 : i32
    return %arg0, %c0_i32, %c0_i32_0 : i32, i32, i32
  }
  func.func @transform_2(%arg0: i32) -> (i32, i32, i32) {
    %c0_i32 = arith.constant 0 : i32
    %c0_i32_0 = arith.constant 0 : i32
    %c0_i32_1 = arith.constant 0 : i32
    return %arg0, %c0_i32, %c0_i32_0 : i32, i32, i32
  }
  func.func @transform_3(%arg0: i32) -> (i32, i32, i32) {
    %c0_i32 = arith.constant 0 : i32
    %c0_i32_0 = arith.constant 0 : i32
    %c0_i32_1 = arith.constant 0 : i32
    return %arg0, %c0_i32, %c0_i32_0 : i32, i32, i32
  }
  func.func @transform_4(%arg0: i32) -> (i32, i32) {
    %c0_i32 = arith.constant 0 : i32
    %c0_i32_0 = arith.constant 0 : i32
    %c0_i32_1 = arith.constant 0 : i32
    return %c0_i32, %c0_i32_0 : i32, i32
  }
  func.func @transform_5(%arg0: i32) -> (i32, i32) {
    %c0_i32 = arith.constant 0 : i32
    %c0_i32_0 = arith.constant 0 : i32
    %c0_i32_1 = arith.constant 0 : i32
    return %c0_i32, %c0_i32_0 : i32, i32
  }
  func.func @transform_6(%arg0: i32) -> (i32, i32) {
    %c0_i32 = arith.constant 0 : i32
    %c0_i32_0 = arith.constant 0 : i32
    %c0_i32_1 = arith.constant 0 : i32
    return %c0_i32, %c0_i32_0 : i32, i32
  }
  func.func @transform_7(%arg0: i32) -> (i32, i32) {
    %c0_i32 = arith.constant 0 : i32
    %c0_i32_0 = arith.constant 0 : i32
    %c0_i32_1 = arith.constant 0 : i32
    return %c0_i32, %c0_i32_0 : i32, i32
  }
  func.func @transform_8(%arg0: i32) -> (i32, i32, i32) {
    %c0_i32 = arith.constant 0 : i32
    %c0_i32_0 = arith.constant 0 : i32
    %c0_i32_1 = arith.constant 0 : i32
    return %arg0, %c0_i32, %c0_i32_0 : i32, i32, i32
  }
}

module attributes {stable_mosaic.version = 11 : i64} {
  func.func @_sparse_mha_kernel(%arg0: i32, %arg1: memref<2xf32, #tpu.memory_space<smem>>, %arg2: memref<2x8x32xbf16, #tpu.memory_space<vmem>>, %arg3: memref<2x8x2xf32, #tpu.memory_space<vmem>>, %arg4: memref<2x2x8xf32, #tpu.memory_space<vmem>>, %arg5: memref<32x96xbf16, #tpu.memory_space<vmem>>, %arg6: memref<1x96xf32, #tpu.memory_space<vmem>>, %arg7: memref<32x32xbf16, #tpu.memory_space<vmem>>, %arg8: memref<1x32xf32, #tpu.memory_space<vmem>>, %arg9: memref<2x8x32xf32, #tpu.memory_space<vmem>>) attributes {dimension_semantics = [#tpu.dimension_semantics<parallel>], iteration_bounds = array<i64: 2>, scalar_prefetch = 0 : i64, scratch_operands = 0 : i64, tpu.core_type = #tpu.core_type<tc>, window_params = [{transform_indices = @transform_0, window_bounds = array<i64: 2>}, {transform_indices = @transform_1, window_bounds = array<i64: 2, 8, 32>}, {transform_indices = @transform_2, window_bounds = array<i64: 2, 8, 2>}, {transform_indices = @transform_3, window_bounds = array<i64: 2, 2, 8>}, {pipeline_mode = #tpu.pipeline_mode<synchronous>, transform_indices = @transform_4, window_bounds = array<i64: 32, 96>}, {pipeline_mode = #tpu.pipeline_mode<synchronous>, transform_indices = @transform_5, window_bounds = array<i64: 1, 96>}, {pipeline_mode = #tpu.pipeline_mode<synchronous>, transform_indices = @transform_6, window_bounds = array<i64: 32, 32>}, {pipeline_mode = #tpu.pipeline_mode<synchronous>, transform_indices = @transform_7, window_bounds = array<i64: 1, 32>}, {transform_indices = @transform_8, window_bounds = array<i64: 2, 8, 32>}]} {
    %c0 = arith.constant 0 : index
    %0 = memref.load %arg1[%c0] : memref<2xf32, #tpu.memory_space<smem>>
    %c1 = arith.constant 1 : index
    %1 = memref.load %arg1[%c1] : memref<2xf32, #tpu.memory_space<smem>>
    %2 = tpu.iota {dimensions = array<i32: 0>} : vector<8x8xi32>
    %3 = tpu.iota {dimensions = array<i32: 1>} : vector<8x8xi32>
    %4 = arith.subi %2, %3 : vector<8x8xi32>
    %5 = math.absi %4 : vector<8x8xi32>
    %6 = arith.sitofp %5 : vector<8x8xi32> to vector<8x8xf32>
    %7 = vector.broadcast %1 : f32 to vector<8x8xf32>
    %8 = arith.cmpf ole, %6, %7 : vector<8x8xf32>
    %c0_0 = arith.constant 0 : index
    %c0_1 = arith.constant 0 : index
    %c0_2 = arith.constant 0 : index
    %9 = vector.load %arg3[%c0_0, %c0_1, %c0_2] : memref<2x8x2xf32, #tpu.memory_space<vmem>>, vector<2x8x2xf32>
    %c0_3 = arith.constant 0 : index
    %c0_4 = arith.constant 0 : index
    %c0_5 = arith.constant 0 : index
    %10 = vector.load %arg4[%c0_3, %c0_4, %c0_5] : memref<2x2x8xf32, #tpu.memory_space<vmem>>, vector<2x2x8xf32>
    %11 = vector.extract_strided_slice %9 {offsets = [0, 0, 0], sizes = [2, 8, 1], strides = [1, 1, 1]} : vector<2x8x2xf32> to vector<2x8x1xf32>
    %12 = vector.extract_strided_slice %10 {offsets = [0, 0, 0], sizes = [2, 1, 8], strides = [1, 1, 1]} : vector<2x2x8xf32> to vector<2x1x8xf32>
    %13 = vector.broadcast %11 : vector<2x8x1xf32> to vector<2x8x8xf32>
    %14 = vector.broadcast %12 : vector<2x1x8xf32> to vector<2x8x8xf32>
    %15 = arith.subf %13, %14 : vector<2x8x8xf32>
    %16 = vector.extract_strided_slice %9 {offsets = [0, 0, 1], sizes = [2, 8, 1], strides = [1, 1, 1]} : vector<2x8x2xf32> to vector<2x8x1xf32>
    %17 = vector.extract_strided_slice %10 {offsets = [0, 1, 0], sizes = [2, 1, 8], strides = [1, 1, 1]} : vector<2x2x8xf32> to vector<2x1x8xf32>
    %18 = vector.broadcast %16 : vector<2x8x1xf32> to vector<2x8x8xf32>
    %19 = vector.broadcast %17 : vector<2x1x8xf32> to vector<2x8x8xf32>
    %20 = arith.subf %18, %19 : vector<2x8x8xf32>
    %21 = arith.mulf %15, %15 : vector<2x8x8xf32>
    %22 = arith.mulf %20, %20 : vector<2x8x8xf32>
    %23 = arith.addf %21, %22 : vector<2x8x8xf32>
    %24 = vector.broadcast %0 : f32 to vector<2x8x8xf32>
    %25 = arith.cmpf ole, %23, %24 : vector<2x8x8xf32>
    %26 = vector.shape_cast %8 : vector<8x8xi1> to vector<1x8x8xi1>
    %27 = vector.broadcast %26 : vector<1x8x8xi1> to vector<2x8x8xi1>
    %28 = arith.andi %25, %27 : vector<2x8x8xi1>
    %cst = arith.constant 0.000000e+00 : f32
    %cst_6 = arith.constant -1.000000e+30 : f32
    %29 = vector.broadcast %cst : f32 to vector<2x8x8xf32>
    %30 = vector.broadcast %cst_6 : f32 to vector<2x8x8xf32>
    %31 = arith.select %28, %29, %30 : vector<2x8x8xi1>, vector<2x8x8xf32>
    %c0_7 = arith.constant 0 : index
    %c0_8 = arith.constant 0 : index
    %c0_9 = arith.constant 0 : index
    %32 = vector.load %arg2[%c0_7, %c0_8, %c0_9] : memref<2x8x32xbf16, #tpu.memory_space<vmem>>, vector<2x8x32xbf16>
    %33 = vector.shape_cast %32 : vector<2x8x32xbf16> to vector<16x32xbf16>
    %c0_10 = arith.constant 0 : index
    %c0_11 = arith.constant 0 : index
    %34 = vector.load %arg5[%c0_10, %c0_11] : memref<32x96xbf16, #tpu.memory_space<vmem>>, vector<32x96xbf16>
    %cst_12 = arith.constant dense<0.000000e+00> : vector<16x96xf32>
    %35 = tpu.matmul %33, %34, %cst_12 {dimension_numbers = #tpu.dot_dimension_numbers<[1], [0], [0], [1], [0, 0, 1, 1], [], []>} : vector<16x32xbf16>, vector<32x96xbf16>, vector<16x96xf32> -> vector<16x96xf32>
    %c0_13 = arith.constant 0 : index
    %c0_14 = arith.constant 0 : index
    %36 = vector.load %arg6[%c0_13, %c0_14] : memref<1x96xf32, #tpu.memory_space<vmem>>, vector<1x96xf32>
    %37 = vector.broadcast %36 : vector<1x96xf32> to vector<16x96xf32>
    %38 = arith.addf %35, %37 : vector<16x96xf32>
    %39 = vector.shape_cast %38 : vector<16x96xf32> to vector<2x8x96xf32>
    %40 = tpu.transpose %39, [0, 2, 1] : vector<2x8x96xf32> -> vector<2x96x8xf32>
    %41 = vector.extract_strided_slice %40 {offsets = [0, 0, 0], sizes = [2, 32, 8], strides = [1, 1, 1]} : vector<2x96x8xf32> to vector<2x32x8xf32>
    %42 = vector.shape_cast %41 : vector<2x32x8xf32> to vector<8x8x8xf32>
    %43 = vector.extract_strided_slice %40 {offsets = [0, 32, 0], sizes = [2, 32, 8], strides = [1, 1, 1]} : vector<2x96x8xf32> to vector<2x32x8xf32>
    %44 = vector.shape_cast %43 : vector<2x32x8xf32> to vector<8x8x8xf32>
    %45 = vector.extract_strided_slice %40 {offsets = [0, 64, 0], sizes = [2, 32, 8], strides = [1, 1, 1]} : vector<2x96x8xf32> to vector<2x32x8xf32>
    %46 = vector.shape_cast %45 : vector<2x32x8xf32> to vector<8x8x8xf32>
    %47 = tpu.transpose %42, [0, 2, 1] : vector<8x8x8xf32> -> vector<8x8x8xf32>
    %48 = arith.truncf %47 : vector<8x8x8xf32> to vector<8x8x8xbf16>
    %49 = arith.truncf %44 : vector<8x8x8xf32> to vector<8x8x8xbf16>
    "tpu.trace_start"() <{level = 10 : i32, message = "bqd,bdk->bqk"}> : () -> ()
    %cst_15 = arith.constant dense<0.000000e+00> : vector<8x8x8xf32>
    %50 = tpu.matmul %48, %49, %cst_15 {dimension_numbers = #tpu.dot_dimension_numbers<[2], [1], [1], [2], [0, 0, 0, 1, 1, 2], [0], [0]>} : vector<8x8x8xbf16>, vector<8x8x8xbf16>, vector<8x8x8xf32> -> vector<8x8x8xf32>
    "tpu.trace_stop"() : () -> ()
    %51 = vector.shape_cast %50 : vector<8x8x8xf32> to vector<2x4x8x8xf32>
    %52 = vector.shape_cast %31 : vector<2x8x8xf32> to vector<2x1x8x8xf32>
    %53 = vector.broadcast %52 : vector<2x1x8x8xf32> to vector<2x4x8x8xf32>
    %54 = arith.addf %51, %53 : vector<2x4x8x8xf32>
    %cst_16 = arith.constant dense<0xFF800000> : vector<2x4x8xf32>
    %55 = vector.multi_reduction <maximumf>, %54, %cst_16 [3] : vector<2x4x8x8xf32> to vector<2x4x8xf32>
    %56 = vector.shape_cast %55 : vector<2x4x8xf32> to vector<2x4x8x1xf32>
    %57 = vector.broadcast %56 : vector<2x4x8x1xf32> to vector<2x4x8x8xf32>
    %58 = arith.subf %54, %57 : vector<2x4x8x8xf32>
    %59 = math.exp %58 : vector<2x4x8x8xf32>
    %cst_17 = arith.constant dense<0.000000e+00> : vector<2x4x8xf32>
    %60 = vector.multi_reduction <add>, %59, %cst_17 [3] : vector<2x4x8x8xf32> to vector<2x4x8xf32>
    %61 = vector.shape_cast %60 : vector<2x4x8xf32> to vector<2x4x8x1xf32>
    %62 = tpu.reciprocal %61 {approx = true} : vector<2x4x8x1xf32> -> vector<2x4x8x1xf32>
    %63 = vector.broadcast %62 : vector<2x4x8x1xf32> to vector<2x4x8x8xf32>
    %64 = arith.mulf %59, %63 : vector<2x4x8x8xf32>
    %65 = vector.shape_cast %64 : vector<2x4x8x8xf32> to vector<8x8x8xf32>
    %66 = arith.truncf %46 : vector<8x8x8xf32> to vector<8x8x8xbf16>
    %67 = arith.truncf %65 : vector<8x8x8xf32> to vector<8x8x8xbf16>
    "tpu.trace_start"() <{level = 10 : i32, message = "bdk,bqk->bdq"}> : () -> ()
    %cst_18 = arith.constant dense<0.000000e+00> : vector<8x8x8xf32>
    %68 = tpu.matmul %66, %67, %cst_18 {dimension_numbers = #tpu.dot_dimension_numbers<[2], [2], [1], [1], [0, 0, 0, 1, 1, 1], [0], [0]>} : vector<8x8x8xbf16>, vector<8x8x8xbf16>, vector<8x8x8xf32> -> vector<8x8x8xf32>
    "tpu.trace_stop"() : () -> ()
    %69 = vector.shape_cast %68 : vector<8x8x8xf32> to vector<2x32x8xf32>
    %70 = tpu.transpose %69, [0, 2, 1] : vector<2x32x8xf32> -> vector<2x8x32xf32>
    %71 = vector.shape_cast %70 : vector<2x8x32xf32> to vector<16x32xf32>
    %72 = arith.truncf %71 : vector<16x32xf32> to vector<16x32xbf16>
    %c0_19 = arith.constant 0 : index
    %c0_20 = arith.constant 0 : index
    %73 = vector.load %arg7[%c0_19, %c0_20] : memref<32x32xbf16, #tpu.memory_space<vmem>>, vector<32x32xbf16>
    %cst_21 = arith.constant dense<0.000000e+00> : vector<16x32xf32>
    %74 = tpu.matmul %72, %73, %cst_21 {dimension_numbers = #tpu.dot_dimension_numbers<[1], [0], [0], [1], [0, 0, 1, 1], [], []>} : vector<16x32xbf16>, vector<32x32xbf16>, vector<16x32xf32> -> vector<16x32xf32>
    %c0_22 = arith.constant 0 : index
    %c0_23 = arith.constant 0 : index
    %75 = vector.load %arg8[%c0_22, %c0_23] : memref<1x32xf32, #tpu.memory_space<vmem>>, vector<1x32xf32>
    %76 = vector.broadcast %75 : vector<1x32xf32> to vector<16x32xf32>
    %77 = arith.addf %74, %76 : vector<16x32xf32>
    %78 = vector.shape_cast %77 : vector<16x32xf32> to vector<2x8x32xf32>
    %c0_24 = arith.constant 0 : index
    %c0_25 = arith.constant 0 : index
    %c0_26 = arith.constant 0 : index
    %79 = vector.load %arg9[%c0_24, %c0_25, %c0_26] : memref<2x8x32xf32, #tpu.memory_space<vmem>>, vector<2x8x32xf32>
    tpu.vector_store %arg9[%c0_24, %c0_25, %c0_26], %78 {strides = array<i32>} : memref<2x8x32xf32, #tpu.memory_space<vmem>>, vector<2x8x32xf32>,
    return
  }
  func.func @transform_0(%arg0: i32) -> i32 {
    %c0_i32 = arith.constant 0 : i32
    %c0_i32_0 = arith.constant 0 : i32
    return %c0_i32 : i32
  }
  func.func @transform_1(%arg0: i32) -> (i32, i32, i32) {
    %c0_i32 = arith.constant 0 : i32
    %c0_i32_0 = arith.constant 0 : i32
    %c0_i32_1 = arith.constant 0 : i32
    return %arg0, %c0_i32, %c0_i32_0 : i32, i32, i32
  }
  func.func @transform_2(%arg0: i32) -> (i32, i32, i32) {
    %c0_i32 = arith.constant 0 : i32
    %c0_i32_0 = arith.constant 0 : i32
    %c0_i32_1 = arith.constant 0 : i32
    return %arg0, %c0_i32, %c0_i32_0 : i32, i32, i32
  }
  func.func @transform_3(%arg0: i32) -> (i32, i32, i32) {
    %c0_i32 = arith.constant 0 : i32
    %c0_i32_0 = arith.constant 0 : i32
    %c0_i32_1 = arith.constant 0 : i32
    return %arg0, %c0_i32, %c0_i32_0 : i32, i32, i32
  }
  func.func @transform_4(%arg0: i32) -> (i32, i32) {
    %c0_i32 = arith.constant 0 : i32
    %c0_i32_0 = arith.constant 0 : i32
    %c0_i32_1 = arith.constant 0 : i32
    return %c0_i32, %c0_i32_0 : i32, i32
  }
  func.func @transform_5(%arg0: i32) -> (i32, i32) {
    %c0_i32 = arith.constant 0 : i32
    %c0_i32_0 = arith.constant 0 : i32
    %c0_i32_1 = arith.constant 0 : i32
    return %c0_i32, %c0_i32_0 : i32, i32
  }
  func.func @transform_6(%arg0: i32) -> (i32, i32) {
    %c0_i32 = arith.constant 0 : i32
    %c0_i32_0 = arith.constant 0 : i32
    %c0_i32_1 = arith.constant 0 : i32
    return %c0_i32, %c0_i32_0 : i32, i32
  }
  func.func @transform_7(%arg0: i32) -> (i32, i32) {
    %c0_i32 = arith.constant 0 : i32
    %c0_i32_0 = arith.constant 0 : i32
    %c0_i32_1 = arith.constant 0 : i32
    return %c0_i32, %c0_i32_0 : i32, i32
  }
  func.func @transform_8(%arg0: i32) -> (i32, i32, i32) {
    %c0_i32 = arith.constant 0 : i32
    %c0_i32_0 = arith.constant 0 : i32
    %c0_i32_1 = arith.constant 0 : i32
    return %arg0, %c0_i32, %c0_i32_0 : i32, i32, i32
  }
}

</mosaic_0001>

<bundles_post_ra>
// kernel: tpu_custom_call.1
= control target key start
LH: loop header
LB: loop body
LE: loop exit
PB: predicated region body
PF: predicated region fallthrough
CT: control target
= control target key end

     0   :  { %13 = vsyncpa [#allocation5], 0  ;;  %s2134_s0 = inlined_call_operand.hbm [shape: f32[2], index: 0, kind: input, shape index: {}]   ;;  %s2135_s1 = inlined_call_operand.vmem [shape: bf16[4,8,32], index: 1, kind: input, shape index: {}]   ;;  %s2136_s2 = inlined_call_operand.vmem [shape: f32[4,8,2], index: 2, kind: input, shape index: {}]   ;;  %s2137_s3 = inlined_call_operand.vmem [shape: f32[4,2,8], index: 3, kind: input, shape index: {}]   ;;  %s2138_s4 = inlined_call_operand.vmem [shape: bf16[32,96], index: 4, kind: input, shape index: {}]   ;;  %s2139_s5 = inlined_call_operand.vmem [shape: f32[1,96], index: 5, kind: input, shape index: {}]   ;;  %s2140_s6 = inlined_call_operand.hbm [shape: bf16[32,32], index: 6, kind: input, shape index: {}]   ;;  %s2141_s7 = inlined_call_operand.vmem [shape: f32[1,32], index: 7, kind: input, shape index: {}]   ;;  %s2142_s8 = inlined_call_operand.hbm [shape: f32[4,8,32], index: 8, kind: output, shape index: {}]  }
   0x1   :  { %14 = vsyncpa [#allocation3], 0 }
   0x2   :  { %15 = vsyncpa [#allocation4], 0 }
   0x3   :  { %17 = vsyncpa [#allocation4 + $0x1], 0  ;;  %s1901_s27 = smov 0   ;;  %s1903_s28 = smov 0  }
   0x4   :  { %s1905_s29 = smov 0   ;;  %s1907_s30 = smov 0  }
   0x5 LB: > { %s1922_s9 = sadd.s32 4294967295, %s1845_s30   ;;  %s1470_s10 = sadd.s32 4294967294, %s1845_s30   ;;  %s1845_s30 = sphi %s1907_s30, %s2151_s30   ;;  %s1841_s29 = sphi %s1905_s29, %s2150_s29   ;;  %s1837_s28 = sphi %s1903_s28, %s2149_s28   ;;  %s1833_s27 = sphi %s1901_s27, %s2148_s27  }
   0x6   : > { %s1926_s11 = sadd.s32 1, %s1845_s30   ;;  %s213_s12 = sadd.s32 1, %s1841_s29 }
   0x7   : > { %s210_s13 = ssub.s32 %s1845_s30, %s1926_s11  ;;  %p223_p0 = scmp.ne.s32.totalorder %s1841_s29, %s1837_s28 }
   0x8   : > { %p211_p1 = scmp.eq.s32.totalorder %s210_s13, 0  ;;  %p224_p2 = scmp.eq.s32.totalorder %s1922_s9, 1 }
   0x9   : > { %p229_p3 = scmp.ne.s32.totalorder %s1837_s28, %s1833_s27  ;;  %p230_p4 = scmp.eq.s32.totalorder %s1470_s10, 1 }
   0xa   : > { %s1937_s14 = scalar_select %p211_p1, %s1841_s29, %s213_s12  }
   0xb   : > { %p1939_p5 = por %p224_p2, %p223_p0  ;;  %p1943_p6 = por %p230_p4, %p229_p3 }
   0xc   : > { %p1471_p7 = scmp.ge.s32.totalorder %s1845_s30, 1  ;;  %p237_p8 = scmp.lt.s32.totalorder %s1845_s30, 3 }
   0xd   : > { %p1556_p9 = scmp.eq.s32.totalorder %s1922_s9, 0  ;;  %s249_s20 = sshll.u32 %s2134_s0, 4  ;;  %s250_s20 = int_to_ptr.hbm [resolvable:$true] %s249_s20 }
   0xe   : > { %p1950_p10 = pnand %p1471_p7, %p237_p8  ;;  %s264_s23 = sshll.u32 %s2140_s6, 4  ;;  %s265_s23 = int_to_ptr.hbm [resolvable:$true] %s264_s23 }
   0xf   : > { %s1847_s24 = smov [#allocation6]   ;;  %s1848_s26 = smov [#allocation2]  }
  0x10   : > { %p1545_p11 = pneg %p1950_p10  ;;  %s266_s25 = sshll.u32 %s1847_s24, 4  ;;  %s267_s25 = int_to_ptr.vmem [resolvable:$true] %s266_s25 }
  0x11   : > { %s1849_s10 = smov 64   ;;  %s1850_s12 = smov 4  }
  0x12   : > { %p1546_p12 = pnand %p1556_p9, %p1545_p11  ;;  %312 = sbr.rel (%p1950_p10) target bundleno = 1472 (0x5c0), region = 52 }
  0x14   : > { %1548 = dma.hbm_to_smem (!%p1546_p12), %s250_s20, 16, %s1848_s26, [#allocation5]  }
  0x15   : > { %1551 = dma.hbm_to_vmem [thread:$0]  (!%p1546_p12), %s265_s23, 256, %s267_s25, [#allocation3], %s1849_s10, %s1849_s10, %s1850_s12  }
  0x17   : > { %1820 = dma.done.wait (%p1556_p9), [#allocation5], 16  }
  0x18   : > { %1822 = vsyncadd (%p1556_p9), [#allocation5], 4294967280 }
  0x19   : > { %1824 = dma.done.wait (%p1556_p9), [#allocation3], 256  }
  0x1a   : > { %1826 = vsyncadd (%p1556_p9), [#allocation3], 4294967040 }
  0x1b   : > { %324 = sfence }
  0x1c   : > { %v1531_v0 = vld [vmem:[%s2138_s4 + $0x8] sm:$0xff]  ;;  %s1479_s17 = sshll.u32 %s1922_s9, 1  ;;  %v1530_v1 = vld [vmem:[%s2138_s4] sm:$0xff]  ;;  %vm468_vm0 = vcmask 261120   ;;  %v1851_v25 = vmov 1   ;;  %v1852_v31 = vmov 0  }
  0x1d   : > { %p364_p13 = scmp.lt.s32.totalorder %s1479_s17, 3  ;;  %478 = vmatpush.bf16.msra.mxu0 %v1531_v0  ;;  %v1696_v4 = vld [vmem:[%s2139_s5] ss:$0 sm:$0xff]  ;;  %vm826_vm1 = vcmask 1043456   ;;  %vm822_vm2 = vcmask 64512   ;;  %s2030_s23 = sld [smem:[#allocation2]] }
  0x1e   : > { %s1534_s12 = sshll.u32 %s1922_s9, 4 }
  0x1f   : > { %s2153_s17 = smov (!%p364_p13, %s1479_s17), 3  ;;  %s1356_s20 = scalar_lea.hbm %s2142_s8, %s1534_s12 }
  0x20   : > { %s1480_s21 = sshll.u32 %s2153_s17, 2  ;;  %s1482_s10 = sshll.u32 %s2153_s17, 3 }
  0x21   : > { %479 = vmatpush.bf16.msra.mxu0 %v1530_v1  ;;  %s367_s24 = scalar_lea.vmem %s2135_s1, %s1480_s21  ;;  %s1996_s18 = scalar_lea.vmem %s2136_s2, %s1482_s10 }
  0x22   : > { %v1529_v2 = vld [vmem:[%s367_s24] sm:$0xff]  ;;  %s1484_s19 = sshll.u32 %s2153_s17, 1  ;;  %s1485_s17 = sld [smem:[#allocation2 + $0x1]] }
  0x23   : > { %v396_v26 = vld [vmem:[%s1996_s18] sm:$0xff]  ;;  %s2027_s22 = scalar_lea.vmem %s2137_s3, %s1484_s19  ;;  %s360_s24 = sand.u32 1, %s1837_s28  }
  0x24   : > { %1498 = vmatmul.msk.bf16.vlgmr.msra.gmra.mxu0 %vm468_vm0, %v1529_v2  ;;  %s1478_s25 = sshll.u32 %s360_s24, 4  ;;  %s1795_s10 = scalar_lea.hbm %s2142_s8, 32 }
  0x25   : > { %s362_s13 = scalar_lea.vmem [#allocation7], %s1478_s25 }
  0x26   : > { %s1357_s21 = sshll.u32 %s362_s13, 4  ;;  %s1358_s21 = int_to_ptr.vmem [resolvable:$true] %s1357_s21 }
  0xa1   : > { %v481_v3 = vpop.f32.mrf.mxu0 }
  0xa2   : > { %v482_v6 = vadd.f32 %v1696_v4, %v481_v3 }
  0xa9   : > { %v483_v5 = vpop.f32.mrf.mxu0 }
  0xaa   : > { %v484_v7 = vadd.f32 %v1696_v4, %v483_v5 }
  0xac   : > { %v1603_v8 = vpack.i.bf16 %v484_v7, %v482_v6 }
  0xae   : > { %1604 = vxpose.xlu0.b32.start.end [1/1] (short) (narrow) %v1603_v8, 96 }
 0x152   : > { %v1605_v9 = vpop.trf.xlu0 }
 0x153   : > { %v1606_v10 = vunpack.i.l.bf16 %v1605_v9  ;;  %v1609_v13 = vunpack.i.h.bf16 %v1605_v9 }
 0x155   : > { %550 = vxpose.xlu1.b32.start.end [1/1] (short) (narrow) %v1606_v10, 8  ;;  %v397_v10 = vld [vmem:[%s1996_s18 + $0x8] sm:$0xff] }
 0x15a   : > { %v1610_v11 = vpop.trf.xlu0 }
 0x15b   : > { %v1614_v12 = vunpack.i.h.bf16 %v1610_v11  ;;  %v1611_v17 = vunpack.i.l.bf16 %v1610_v11  ;;  %v385_v11 = vlaneseq }
 0x15d   : > { %v1672_v14 = vpack.i.bf16 %v1614_v12, %v1609_v13  ;;  %v386_v12 = vshrl.u32 %v385_v11, 7  ;;  %v388_v13 = vand.u32 127, %v385_v11 }
 0x15f   : > { %1673 = vxpose.xlu1.b32.start.end [1/1] (short) (narrow) %v1672_v14, 8  ;;  %v398_v14 = vld [vmem:[%s2027_s22] sm:$0x3] }
 0x162   : > { %v1615_v15 = vpop.trf.xlu0 }
 0x163   : > { %v1616_v16 = vunpack.i.l.bf16 %v1615_v15  ;;  %v1619_v21 = vunpack.i.h.bf16 %v1615_v15  ;;  %v410_v15 = vperm.slane %v398_v14, 0 }
 0x165   : > { %v1665_v18 = vpack.i.bf16 %v1616_v16, %v1611_v17  ;;  %v389_v17 = vsub.s32 %v386_v12, %v388_v13 }
 0x167   : > { %1666 = vxpose.xlu0.b32.start.end [1/1] (short) (narrow) %v1665_v18, 8  ;;  %v422_v18 = vperm.slane %v398_v14, 1  ;;  %vm390_vm3 = vcmp.lt.s32.totalorder %v389_v17, 0 }
 0x16a   : > { %v1620_v19 = vpop.trf.xlu0 }
 0x16b   : > { %v1621_v20 = vunpack.i.l.bf16 %v1620_v19  ;;  %v1624_v43 = vunpack.i.h.bf16 %v1620_v19 }
 0x16d   : > { %646 = vxpose.xlu2.b32.start.end [1/1] (short) (narrow) %v1621_v20, 8 }
 0x172   : > { %v1625_v22 = vpop.trf.xlu0 }
 0x173   : > { %v1626_v30 = vunpack.i.l.bf16 %v1625_v22  ;;  %v1629_v46 = vunpack.i.h.bf16 %v1625_v22 }
 0x175   : > { %742 = vxpose.xlu2.b32.start.end [1/1] (short) (narrow) %v1619_v21, 8  ;;  %v814_v32 = vpack.c.bf16 %v1626_v30, %v1626_v30  ;;  %v818_v48 = vpack.c.bf16 %v1629_v46, %v1629_v46  ;;  %v391_v21 = vsub.s32 0, %v389_v17 }
 0x177   : > { %v828_v33 = vsel %vm826_vm1, %v814_v32, 0  ;;  %v904_v50 = vsel %vm826_vm1, %v818_v48, 0  ;;  %v394_v32 = vstv %s1485_s17 }
 0x178   : > { %837 = vmatpush.bf16.msra.mxu1 %v828_v33 }
 0x17a   : > { %v1630_v23 = vpop.trf.xlu0 }
 0x17b   : > { %v1631_v39 = vunpack.i.l.bf16 %v1630_v23  ;;  %v1634_v47 = vunpack.i.h.bf16 %v1630_v23 }
 0x17d   : > { %v815_v41 = vpack.c.bf16 %v1631_v39, %v1631_v39  ;;  %v819_v49 = vpack.c.bf16 %v1634_v47, %v1634_v47 }
 0x17f   : > { %v847_v44 = vsel %vm826_vm1, %v815_v41, 0  ;;  %v923_v51 = vsel %vm826_vm1, %v819_v49, 0 }
 0x180   : > { %856 = vmatpush.bf16.msra.mxu2 %v847_v44 }
 0x182   : > { %v1635_v24 = vpop.trf.xlu0 }
 0x183   : > { %v1636_v40 = vunpack.i.l.bf16 %v1635_v24  ;;  %v1639_v60 = vunpack.i.h.bf16 %v1635_v24  ;;  %v392_v24 = vsel %vm390_vm3, %v391_v21, %v389_v17 }
 0x184   : > { %913 = vmatpush.bf16.msrb.mxu2 %v904_v50  ;;  %v393_v30 = vcvt.s32.f32 %v392_v24 }
 0x185   : > { %v816_v42 = vpack.c.bf16 %v1636_v40, %v1636_v40  ;;  %v820_v63 = vpack.c.bf16 %v1639_v60, %v1639_v60 }
 0x186   : > { %vm2033_vm5 = vcmp.le.f32.partialorder %v393_v30, %v394_v32 }
 0x187   : > { %v866_v45 = vsel %vm826_vm1, %v816_v42, 0  ;;  %v942_v2 = vsel %vm826_vm1, %v820_v63, 0 }
 0x188   : > { %875 = vmatpush.bf16.msra.mxu3 %v866_v45  ;;  %951 = vmatpush.bf16.msrb.mxu0 %v942_v2 }
 0x18a   : > { %v1640_v27 = vpop.trf.xlu0 }
 0x18b   : > { %v1641_v35 = vunpack.i.l.bf16 %v1640_v27  ;;  %v1644_v3 = vunpack.i.h.bf16 %v1640_v27 }
 0x18c   : > { %932 = vmatpush.bf16.msrb.mxu3 %v923_v51 }
 0x18d   : > { %v817_v36 = vpack.c.bf16 %v1641_v35, %v1641_v35  ;;  %v821_v4 = vpack.c.bf16 %v1644_v3, %v1644_v3  ;;  %v1853_v35 = vmov -1e+30  }
 0x18f   : > { %v885_v37 = vsel %vm826_vm1, %v817_v36, 0  ;;  %v961_v7 = vsel %vm826_vm1, %v821_v4, 0 }
 0x190   : > { %894 = vmatpush.bf16.msrb.mxu1 %v885_v37 }
 0x192   : > { %v1999_v28 = vpop.trf.xlu0 }
 0x19a   : > { %v2001_v29 = vpop.trf.xlu0 }
 0x1a2   : > { %v2004_v34 = vpop.trf.xlu0 }
 0x1aa   : > { %v2007_v38 = vpop.trf.xlu0 }
 0x1b2   : > { %1680 = vset.pattern.permute.xlu1 %v1851_v25 }
 0x1b9   : > { %415 = vperm.xlu1 %1680, %v396_v26  }
 0x1ce   : > { %1681 = vset.pattern.permute.xlu0 %v1852_v31 }
 0x1d5   : > { %407 = vperm.xlu0 %1681, %v397_v10  }
 0x1d7   : > { %1679 = vset.pattern.permute.xlu2 %v1852_v31  ;;  %v432_v31 = vstv %s2030_s23  ;;  %s1345_s23 = scalar_lea.sflag [#allocation4], %s360_s24 }
 0x1de   : > { %402 = vperm.xlu2 %1679, %v396_v26  }
 0x1ee   : > { %774 = vxpose.xlu1.b32.start.end [1/1] (short) (narrow) %v1624_v43, 8 }
 0x1f9   : > { %v566_v52 = vpop.trf.xlu1 }
 0x1fa   : > { %v806_v53 = vpack.c.bf16 %v566_v52, %v566_v52 }
 0x1fc   : > { %1499 = vmatmul.msk.bf16.vlgmr.msra.gmra.mxu1 %vm822_vm2, %v806_v53 }
 0x1fd   : > { %970 = vmatpush.bf16.msra.mxu1 %v961_v7 }
 0x203   : > { %v1674_v54 = vpop.trf.xlu1 }
 0x204   : > { %v1678_v5 = vunpack.i.h.bf16 %v1674_v54  ;;  %v1675_v6 = vunpack.i.l.bf16 %v1674_v54 }
 0x206   : > { %v662_v55 = vpop.trf.xlu2  ;;  %v811_v8 = vpack.c.bf16 %v1678_v5, %v1678_v5  ;;  %v810_v9 = vpack.c.bf16 %v1675_v6, %v1675_v6 }
 0x207   : > { %v809_v56 = vpack.c.bf16 %v662_v55, %v662_v55 }
 0x20b   : > { %v1667_v57 = vpop.trf.xlu0 }
 0x20c   : > { %1502 = vmatmul.msk.bf16.vlgmr.msrb.gmra.mxu1 %vm822_vm2, %v809_v56  ;;  %v1668_v58 = vunpack.i.l.bf16 %v1667_v57  ;;  %v1671_v59 = vunpack.i.h.bf16 %v1667_v57 }
 0x20e   : > { %v807_v61 = vpack.c.bf16 %v1668_v58, %v1668_v58  ;;  %v808_v62 = vpack.c.bf16 %v1671_v59, %v1671_v59  ;;  %v758_v0 = vpop.trf.xlu2 }
 0x20f   : > { %v812_v1 = vpack.c.bf16 %v758_v0, %v758_v0 }
 0x210   : > { %1500 = vmatmul.msk.bf16.vlgmr.msra.gmra.mxu2 %vm822_vm2, %v807_v61  ;;  %1501 = vmatmul.msk.bf16.vlgmr.msra.gmra.mxu3 %vm822_vm2, %v808_v62  ;;  %v399_v62 = vld [vmem:[%s2027_s22 + $0x2] sm:$0x3]  ;;  %s1359_s22 = sshll.u32 %s1356_s20, 4  ;;  %s1360_s22 = int_to_ptr.hbm [resolvable:$true] %s1359_s22 }
 0x211   : > { %1505 = vmatmul.msk.bf16.vlgmr.msrb.gmra.mxu0 %vm822_vm2, %v812_v1  ;;  %v411_v63 = vperm.slane %v399_v62, 0  ;;  %v423_v2 = vperm.slane %v399_v62, 1  ;;  %s1789_s17 = sshra.s32 %s1360_s22, 4  ;;  %s1790_s17 = int_to_ptr.hbm [resolvable:$true] %s1789_s17 }
 0x212   : > { %s1791_s9 = scalar_lea.hbm %s1790_s17, 16  ;;  %p1796_p3 = scmp.lt.s32.totalorder %s1790_s17, %s2142_s8 }
 0x213   : > { %p1792_p0 = scmp.ne.s32.totalorder %s1790_s17, %s1791_s9  ;;  %p1797_p4 = scmp.lt.s32.totalorder %s1795_s10, %s1791_s9 }
 0x215   : > { %p1793_p1 = pnand %p1792_p0, %p1939_p5  ;;  %p1798_p7 = por %p1797_p4, %p1796_p3 }
 0x217   : > { %p1794_p2 = pneg %p1793_p1 }
 0x219   : > { %p1799_p8 = pnand %p1798_p7, %p1794_p2 }
 0x220   : > { %1503 = vmatmul.msk.bf16.vlgmr.msrb.gmra.mxu2 %vm822_vm2, %v810_v9  ;;  %1504 = vmatmul.msk.bf16.vlgmr.msrb.gmra.mxu3 %vm822_vm2, %v811_v8 }
 0x22b   : > { %v416_v19 = vpop.permute.xlu1 %415 }
 0x22c   : > { %v424_v22 = vsub.f32 %v416_v19, %v422_v18 }
 0x22e   : > { %v428_v26 = vmul.f32 %v424_v22, %v424_v22 }
 0x238   : > { %v403_v16 = vpop.permute.xlu2 %402 }
 0x239   : > { %v412_v20 = vsub.f32 %v403_v16, %v410_v15 }
 0x23b   : > { %v426_v23 = vmul.f32 %v412_v20, %v412_v20 }
 0x23d   : > { %v430_v27 = vadd.f32 %v428_v26, %v426_v23 }
 0x23f   : > { %vm433_vm4 = vcmp.le.f32.partialorder %v430_v27, %v432_v31 }
 0x240   : > { %vm437_vm6 = vmand %vm433_vm4, %vm2033_vm5 }
 0x241   : > { %v439_v36 = vsel %vm437_vm6, 0.0, %v1853_v35 }
 0x247   : > { %v408_v0 = vpop.permute.xlu0 %407 }
 0x248   : > { %419 = vperm.xlu1 %1680, %v397_v10   ;;  %v413_v1 = vsub.f32 %v408_v0, %v411_v63  ;;  %v1646_v0 = vunpack.i.l.bf16 %v1999_v28 }
 0x24a   : > { %v427_v4 = vmul.f32 %v413_v1, %v413_v1  ;;  %v1072_v1 = vpack.c.bf16 %v1646_v0, %v1646_v0 }
 0x279   : > { %v839_v37 = vpop.f32.mrf.mxu1 }
 0x27a   : > { %v976_v39 = vadd.f32 %v839_v37, %v439_v36 }
 0x27c   : > { %v984_v40 = vsel %vm822_vm2, %v976_v39, -inf }
 0x27d   : > { %985 = vmax.xlane.f32.xlu2 %v984_v40 }
 0x281   : > { %v841_v41 = vpop.f32.mrf.mxu1 }
 0x289   : > { %v896_v42 = vpop.f32.mrf.mxu1 }
 0x28a   : > { %v979_v52 = vadd.f32 %v896_v42, %v439_v36 }
 0x28c   : > { %v993_v55 = vsel %vm822_vm2, %v979_v52, -inf }
 0x28e   : > { %v953_v58 = vpop.f32.mrf.mxu0 }
 0x291   : > { %v898_v43 = vpop.f32.mrf.mxu1 }
 0x292   : > { %v790_v44 = vpop.trf.xlu1 }
 0x293   : > { %v813_v45 = vpack.c.bf16 %v790_v44, %v790_v44  ;;  %v858_v46 = vpop.f32.mrf.mxu2  ;;  %v877_v47 = vpop.f32.mrf.mxu3 }
 0x294   : > { %v977_v48 = vadd.f32 %v858_v46, %v439_v36  ;;  %v978_v49 = vadd.f32 %v877_v47, %v439_v36 }
 0x295   : > { %1506 = vmatmul.msk.bf16.vlgmr.msra.gmra.mxu1 %vm822_vm2, %v813_v45 }
 0x296   : > { %v987_v50 = vsel %vm822_vm2, %v977_v48, -inf  ;;  %v990_v51 = vsel %vm822_vm2, %v978_v49, -inf  ;;  %v955_v61 = vpop.f32.mrf.mxu0 }
 0x297   : > { %988 = vmax.xlane.f32.xlu1 %v987_v50  ;;  %991 = vmax.xlane.f32.xlu2 %v990_v51 }
 0x29b   : > { %v860_v53 = vpop.f32.mrf.mxu2  ;;  %v879_v54 = vpop.f32.mrf.mxu3 }
 0x29f   : > { %994 = vmax.xlane.f32.xlu1 %v993_v55 }
 0x2a3   : > { %v915_v56 = vpop.f32.mrf.mxu2  ;;  %v934_v57 = vpop.f32.mrf.mxu3 }
 0x2ab   : > { %v917_v59 = vpop.f32.mrf.mxu2  ;;  %v936_v60 = vpop.f32.mrf.mxu3 }
 0x2ba   : > { %v420_v3 = vpop.permute.xlu1 %419 }
 0x2bb   : > { %v425_v5 = vsub.f32 %v420_v3, %v423_v2 }
 0x2bd   : > { %v429_v6 = vmul.f32 %v425_v5, %v425_v5 }
 0x2bf   : > { %v431_v7 = vadd.f32 %v429_v6, %v427_v4 }
 0x2c1   : > { %vm434_vm7 = vcmp.le.f32.partialorder %v431_v7, %v432_v31 }
 0x2c2   : > { %vm438_vm8 = vmand %vm434_vm7, %vm2033_vm5 }
 0x2c3   : > { %v440_v8 = vsel %vm438_vm8, 0.0, %v1853_v35 }
 0x2c4   : > { %v980_v9 = vadd.f32 %v915_v56, %v440_v8  ;;  %v981_v10 = vadd.f32 %v934_v57, %v440_v8  ;;  %v982_v13 = vadd.f32 %v953_v58, %v440_v8 }
 0x2c6   : > { %v999_v11 = vsel %vm822_vm2, %v981_v10, -inf  ;;  %v996_v12 = vsel %vm822_vm2, %v980_v9, -inf  ;;  %v1002_v14 = vsel %vm822_vm2, %v982_v13, -inf }
 0x2c7   : > { %1000 = vmax.xlane.f32.xlu1 %v999_v11  ;;  %997 = vmax.xlane.f32.xlu2 %v996_v12 }
 0x2cf   : > { %1003 = vmax.xlane.f32.xlu2 %v1002_v14  ;;  %v1656_v14 = vunpack.i.l.bf16 %v2004_v34 }
 0x2f0   : > { %v986_v15 = vpop.xlane.xlu2 %985 }
 0x2f1   : > { %v1008_v16 = vsub.f32 %v976_v39, %v986_v15 }
 0x2f3   : > { %v1016_v17 = vmul.f32 1.442695, %v1008_v16 }
 0x2f5   : > { %1698 = vpow2.f32 %v1016_v17 }
 0x2fb   : > { %v1699_v18 = vpop.eup %1698 }
 0x2fc   : > { %v1032_v19 = vsel %vm822_vm2, %v1699_v18, 0.0 }
 0x2fd   : > { %1033 = vadd.xlane.f32.xlu2 %v1032_v19 }
 0x30a   : > { %v992_v20 = vpop.xlane.xlu2 %991  ;;  %v989_v21 = vpop.xlane.xlu1 %988 }
 0x30b   : > { %v1010_v22 = vsub.f32 %v978_v49, %v992_v20  ;;  %v1009_v23 = vsub.f32 %v977_v48, %v989_v21  ;;  %v1651_v20 = vunpack.i.l.bf16 %v2001_v29 }
 0x30d   : > { %v1020_v24 = vmul.f32 1.442695, %v1010_v22  ;;  %v1018_v26 = vmul.f32 1.442695, %v1009_v23  ;;  %v1073_v23 = vpack.c.bf16 %v1651_v20, %v1651_v20 }
 0x30f   : > { %1700 = vpow2.f32 %v1020_v24 }
 0x310   : > { %1702 = vpow2.f32 %v1018_v26 }
 0x312   : > { %v972_v27 = vpop.f32.mrf.mxu1  ;;  %v995_v30 = vpop.xlane.xlu1 %994 }
 0x313   : > { %v983_v31 = vadd.f32 %v972_v27, %v440_v8  ;;  %v1011_v32 = vsub.f32 %v979_v52, %v995_v30  ;;  %v1661_v27 = vunpack.i.l.bf16 %v2007_v38 }
 0x315   : > { %v1701_v33 = vpop.eup %1700  ;;  %v1005_v35 = vsel %vm822_vm2, %v983_v31, -inf  ;;  %v1022_v37 = vmul.f32 1.442695, %v1011_v32  ;;  %v1075_v30 = vpack.c.bf16 %v1661_v27, %v1661_v27 }
 0x316   : > { %1006 = vmax.xlane.f32.xlu1 %v1005_v35  ;;  %v1038_v36 = vsel %vm822_vm2, %v1701_v33, 0.0  ;;  %v1703_v39 = vpop.eup %1702 }
 0x317   : > { %1039 = vadd.xlane.f32.xlu2 %v1038_v36  ;;  %1704 = vpow2.f32 %v1022_v37  ;;  %v1035_v41 = vsel %vm822_vm2, %v1703_v39, 0.0 }
 0x31a   : > { %v974_v40 = vpop.f32.mrf.mxu1 }
 0x31d   : > { %v1705_v42 = vpop.eup %1704 }
 0x31e   : > { %1036 = vadd.xlane.f32.xlu1 %v1035_v41  ;;  %v1041_v43 = vsel %vm822_vm2, %v1705_v42, 0.0 }
 0x326   : > { %1042 = vadd.xlane.f32.xlu1 %v1041_v43 }
 0x33a   : > { %v1001_v44 = vpop.xlane.xlu1 %1000  ;;  %v998_v45 = vpop.xlane.xlu2 %997 }
 0x33b   : > { %v1013_v46 = vsub.f32 %v981_v10, %v1001_v44  ;;  %v1012_v47 = vsub.f32 %v980_v9, %v998_v45  ;;  %v1654_v44 = vunpack.i.h.bf16 %v2001_v29  ;;  %v1649_v45 = vunpack.i.h.bf16 %v1999_v28 }
 0x33d   : > { %v1026_v48 = vmul.f32 1.442695, %v1013_v46  ;;  %v1024_v49 = vmul.f32 1.442695, %v1012_v47 }
 0x33f   : > { %1706 = vpow2.f32 %v1026_v48  ;;  %v1077_v48 = vpack.c.bf16 %v1654_v44, %v1654_v44 }
 0x340   : > { %1708 = vpow2.f32 %v1024_v49  ;;  %v1076_v49 = vpack.c.bf16 %v1649_v45, %v1649_v45 }
 0x342   : > { %v1004_v50 = vpop.xlane.xlu2 %1003 }
 0x343   : > { %v1014_v51 = vsub.f32 %v982_v13, %v1004_v50 }
 0x345   : > { %v2055_v52 = vpop.eup %1706  ;;  %v1028_v53 = vmul.f32 1.442695, %v1014_v51 }
 0x346   : > { %v2057_v54 = vpop.eup %1708  ;;  %v1047_v55 = vsel %vm822_vm2, %v2055_v52, 0.0 }
 0x347   : > { %1710 = vpow2.f32 %v1028_v53  ;;  %1048 = vadd.xlane.f32.xlu1 %v1047_v55  ;;  %v1044_v56 = vsel %vm822_vm2, %v2057_v54, 0.0 }
 0x348   : > { %1045 = vadd.xlane.f32.xlu2 %v1044_v56 }
 0x34d   : > { %v2063_v57 = vpop.eup %1710 }
 0x34e   : > { %v1050_v58 = vsel %vm822_vm2, %v2063_v57, 0.0 }
 0x350   : > { %1051 = vadd.xlane.f32.xlu2 %v1050_v58 }
 0x370   : > { %v1034_v59 = vpop.xlane.xlu2 %1033 }
 0x371   : > { %1712 = vrcp.f32 %v1034_v59  ;;  %v1664_v59 = vunpack.i.h.bf16 %v2007_v38 }
 0x377   : > { %v1713_v60 = vpop.eup %1712 }
 0x378   : > { %v1064_v61 = vmul.f32 %v1713_v60, %v1699_v18  ;;  %v1074_v18 = vpack.c.bf16 %v1656_v14, %v1656_v14  ;;  %v1079_v60 = vpack.c.bf16 %v1664_v59, %v1664_v59  ;;  %v1532_v14 = vld [vmem:[#allocation6] sm:$0xff] }
 0x37a   : > { %v1080_v62 = vpack.c.bf16 %v1064_v61, %v1064_v61 }
 0x37c   : > { %v1092_v63 = vsel %vm822_vm2, %v1080_v62, 0 }
 0x37d   : > { %1101 = vmatpush.bf16.xpose.msra.mxu2 %v1092_v63 }
 0x384   : > { %1507 = vmatmul.msk.bf16.vlgmr.msra.gmra.mxu2 %vm822_vm2, %v1072_v1 }
 0x389   : > { %v1007_v2 = vpop.xlane.xlu1 %1006 }
 0x38a   : > { %v1015_v3 = vsub.f32 %v983_v31, %v1007_v2  ;;  %v1040_v4 = vpop.xlane.xlu2 %1039 }
 0x38b   : > { %1714 = vrcp.f32 %v1040_v4 }
 0x38c   : > { %v1030_v5 = vmul.f32 1.442695, %v1015_v3 }
 0x38e   : > { %1716 = vpow2.f32 %v1030_v5 }
 0x391   : > { %v1715_v6 = vpop.eup %1714  ;;  %v1037_v7 = vpop.xlane.xlu1 %1036 }
 0x392   : > { %1718 = vrcp.f32 %v1037_v7  ;;  %v1066_v8 = vmul.f32 %v1715_v6, %v1701_v33 }
 0x394   : > { %v1717_v9 = vpop.eup %1716  ;;  %v1082_v10 = vpack.c.bf16 %v1066_v8, %v1066_v8 }
 0x395   : > { %v1053_v11 = vsel %vm822_vm2, %v1717_v9, 0.0 }
 0x396   : > { %1054 = vadd.xlane.f32.xlu1 %v1053_v11  ;;  %v1130_v12 = vsel %vm822_vm2, %v1082_v10, 0  ;;  %v1533_v10 = vld [vmem:[#allocation6 + $0x8] sm:$0xff] }
 0x397   : > { %1139 = vmatpush.bf16.xpose.msra.mxu0 %v1130_v12 }
 0x398   : > { %v1719_v13 = vpop.eup %1718 }
 0x399   : > { %v1043_v15 = vpop.xlane.xlu1 %1042  ;;  %v1065_v16 = vmul.f32 %v1719_v13, %v1703_v39 }
 0x39a   : > { %1720 = vrcp.f32 %v1043_v15 }
 0x39b   : > { %v1081_v17 = vpack.c.bf16 %v1065_v16, %v1065_v16 }
 0x39d   : > { %v1111_v19 = vsel %vm822_vm2, %v1081_v17, 0 }
 0x39e   : > { %1120 = vmatpush.bf16.xpose.msra.mxu3 %v1111_v19  ;;  %1509 = vmatmul.msk.bf16.vlgmr.msra.gmra.mxu0 %vm822_vm2, %v1074_v18  ;;  %v1697_v19 = vld [vmem:[%s2141_s7] ss:$0 sm:$0xff] }
 0x3a0   : > { %v1721_v21 = vpop.eup %1720 }
 0x3a1   : > { %v1067_v22 = vmul.f32 %v1721_v21, %v1705_v42 }
 0x3a3   : > { %v1083_v24 = vpack.c.bf16 %v1067_v22, %v1067_v22 }
 0x3a5   : > { %1508 = vmatmul.msk.bf16.vlgmr.msra.gmra.mxu3 %vm822_vm2, %v1073_v23  ;;  %v1149_v26 = vsel %vm822_vm2, %v1083_v24, 0 }
 0x3a6   : > { %1158 = vmatpush.bf16.xpose.msrb.mxu1 %v1149_v26 }
 0x3ad   : > { %1510 = vmatmul.msk.bf16.vlgmr.msrb.gmra.mxu1 %vm822_vm2, %v1075_v30 }
 0x3ba   : > { %v1049_v31 = vpop.xlane.xlu1 %1048 }
 0x3bb   : > { %1722 = vrcp.f32 %v1049_v31  ;;  %v1046_v32 = vpop.xlane.xlu2 %1045 }
 0x3bc   : > { %1724 = vrcp.f32 %v1046_v32 }
 0x3c1   : > { %v1723_v33 = vpop.eup %1722 }
 0x3c2   : > { %v1725_v35 = vpop.eup %1724  ;;  %v1069_v36 = vmul.f32 %v1723_v33, %v2055_v52  ;;  %v1659_v52 = vunpack.i.h.bf16 %v2004_v34 }
 0x3c3   : > { %v1052_v37 = vpop.xlane.xlu2 %1051  ;;  %v1068_v39 = vmul.f32 %v1725_v35, %v2057_v54 }
 0x3c4   : > { %1726 = vrcp.f32 %v1052_v37  ;;  %v1085_v40 = vpack.c.bf16 %v1069_v36, %v1069_v36  ;;  %v1078_v53 = vpack.c.bf16 %v1659_v52, %v1659_v52 }
 0x3c5   : > { %v1084_v41 = vpack.c.bf16 %v1068_v39, %v1068_v39 }
 0x3c6   : > { %v1187_v42 = vsel %vm822_vm2, %v1085_v40, 0 }
 0x3c7   : > { %v1168_v43 = vsel %vm822_vm2, %v1084_v41, 0  ;;  %1196 = vmatpush.bf16.xpose.msrb.mxu3 %v1187_v42 }
 0x3c8   : > { %1177 = vmatpush.bf16.xpose.msrb.mxu2 %v1168_v43 }
 0x3ca   : > { %v1727_v46 = vpop.eup %1726 }
 0x3cb   : > { %v1070_v47 = vmul.f32 %v1727_v46, %v2063_v57 }
 0x3cd   : > { %v1086_v50 = vpack.c.bf16 %v1070_v47, %v1070_v47 }
 0x3ce   : > { %1512 = vmatmul.msk.bf16.vlgmr.msrb.gmra.mxu3 %vm822_vm2, %v1077_v48 }
 0x3cf   : > { %1511 = vmatmul.msk.bf16.vlgmr.msrb.gmra.mxu2 %vm822_vm2, %v1076_v49  ;;  %v1206_v51 = vsel %vm822_vm2, %v1086_v50, 0 }
 0x3d0   : > { %1215 = vmatpush.bf16.xpose.msrb.mxu0 %v1206_v51  ;;  %1334 = vmatpush.bf16.msra.mxu2 %v1533_v10 }
 0x3d4   : > { %1335 = vmatpush.bf16.msra.mxu2 %v1532_v14 }
 0x3d7   : > { %1513 = vmatmul.msk.bf16.vlgmr.msrb.gmra.mxu0 %vm822_vm2, %v1078_v53 }
 0x407   : > { %v1103_v29 = vpop.f32.mrf.mxu2 }
 0x409   : > { %v1055_v28 = vpop.xlane.xlu1 %1054 }
 0x40a   : > { %1728 = vrcp.f32 %v1055_v28 }
 0x40f   : > { %v1105_v54 = vpop.f32.mrf.mxu2 }
 0x410   : > { %v1729_v55 = vpop.eup %1728 }
 0x411   : > { %v1071_v56 = vmul.f32 %v1729_v55, %v1717_v9 }
 0x413   : > { %v1087_v57 = vpack.c.bf16 %v1071_v56, %v1071_v56 }
 0x415   : > { %v1225_v58 = vsel %vm822_vm2, %v1087_v57, 0 }
 0x416   : > { %1234 = vmatpush.bf16.xpose.msra.mxu1 %v1225_v58 }
 0x41b   : > { %v1141_v61 = vpop.f32.mrf.mxu0 }
 0x41d   : > { %1514 = vmatmul.msk.bf16.vlgmr.msra.gmra.mxu1 %vm822_vm2, %v1079_v60 }
 0x423   : > { %v1143_v34 = vpop.f32.mrf.mxu0 }
 0x428   : > { %v1122_v62 = vpop.f32.mrf.mxu3 }
 0x42a   : > { %v1160_v63 = vpop.f32.mrf.mxu1 }
 0x430   : > { %v1124_v0 = vpop.f32.mrf.mxu3 }
 0x432   : > { %v1162_v1 = vpop.f32.mrf.mxu1 }
 0x451   : > { %v1198_v2 = vpop.f32.mrf.mxu3 }
 0x452   : > { %v1179_v3 = vpop.f32.mrf.mxu2  ;;  %v1684_v8 = vpack.i.bf16 %v1198_v2, %v1122_v62 }
 0x453   : > { %v1682_v4 = vpack.i.bf16 %v1179_v3, %v1103_v29 }
 0x454   : > { %v1217_v5 = vpop.f32.mrf.mxu0 }
 0x455   : > { %1683 = vxpose.xlu0.b32.start [1/4] (short) (narrow) %v1682_v4, 8  ;;  %v1686_v38 = vpack.i.bf16 %v1217_v5, %v1141_v61 }
 0x459   : > { %v1200_v6 = vpop.f32.mrf.mxu3 }
 0x45a   : > { %v1181_v7 = vpop.f32.mrf.mxu2 }
 0x45c   : > { %v1219_v9 = vpop.f32.mrf.mxu0 }
 0x45d   : > { %1685 = vxpose.xlu0.b32.cont [2/4] (short) (narrow) %v1684_v8, 8 }
 0x465   : > { %1687 = vxpose.xlu0.b32.cont [3/4] (short) (narrow) %v1686_v38, 8 }
 0x49a   : > { %v1236_v11 = vpop.f32.mrf.mxu1 }
 0x49b   : > { %v1688_v12 = vpack.i.bf16 %v1236_v11, %v1160_v63 }
 0x49d   : > { %1689 = vxpose.xlu0.b32.end [4/4] (short) (narrow) %v1688_v12, 8 }
 0x4a2   : > { %v1238_v13 = vpop.f32.mrf.mxu1 }
 0x504   : > { %1695 = vset.pattern.permute.xlu0 %v1851_v25 }
 0x529   : > { %v1690_v15 = vpop.trf.xlu0 }
 0x52a   : > { %v1694_v16 = vunpack.i.h.bf16 %v1690_v15  ;;  %v1691_v17 = vunpack.i.l.bf16 %v1690_v15 }
 0x52c   : > { %v1304_v18 = vpack.c.bf16 %v1694_v16, %v1691_v17 }
 0x52e   : > { %1523 = vmatmul.msk.bf16.vlgmr.msra.gmra.mxu2 %vm468_vm0, %v1304_v18 }
 0x5b1   : > { %v1337_v20 = vpop.f32.mrf.mxu2 }
 0x5b2   : > { %v1338_v21 = vadd.f32 %v1697_v19, %v1337_v20 }
 0x5b4   : > { %1342 = vst.msk [vmem:[%s362_s13] sm:$0xff] %vm468_vm0, %v1338_v21 }
 0x5b9   : > { %v1339_v25 = vpop.f32.mrf.mxu2 }
 0x5ba   : > { %v1340_v22 = vadd.f32 %v1697_v19, %v1339_v25 }
 0x5bc   : > { %1343 = vst.msk [vmem:[%s362_s13 + $0x8] sm:$0xff] %vm468_vm0, %v1340_v22 }
 0x5bd   : > { %1802 = shalt.err (!%p1799_p8)
}
 0x5be   : > { %s1854_s24 = smov 128   ;;  %s1855_s13 = smov 8  }
 0x5bf   : > { %1543 = dma.vmem_to_hbm [thread:$0]  (%p1939_p5), %s1358_s21, 256, %s1360_s22, %s1345_s23, %s1854_s24, %s1854_s24, %s1855_s13  }
 0x5c0 PF: > { %p1560_p9 = scmp.ge.s32.totalorder %s1845_s30, 2  ;;  %s1374_s19 = sand.u32 1, %s1833_s27  }
 0x5c1   : > { %s1375_s20 = scalar_lea.sflag [#allocation4], %s1374_s19 }
 0x5c2   : > { %p1553_p10 = pnand %p1560_p9, %p1943_p6 }
 0x5c4   : > { %p1554_p11 = pneg %p1553_p10 }
 0x5c6   : > { %1828 = dma.done.wait (%p1554_p11), %s1375_s20, 256  }
 0x5c7   : > { %1830 = vsyncadd (%p1554_p11), %s1375_s20, 4294967040  ;;  %p20_p12 = scmp.ge.s32.totalorder %s1926_s11, 4   ;;  %s2148_s27 = smov %s1837_s28 }
 0x5c8   : > { %s2149_s28 = smov %s1841_s29  ;;  %s2150_s29 = smov %s1937_s14 }
 0x5c9   : > { %s2151_s30 = smov %s1926_s11  ;;  %22 = sbr.rel (!%p20_p12) target bundleno = 5 (0x5), region = 103 }
 0x5ce   :  { %1381 = vsyncpa [#allocation3], 1 }
 0x5cf   :  { %1383 = vsyncpa [#allocation3 + $0x1], 1 }
 0x5d0   :  { %1384 = vsyncpa [#allocation4], 1 }
 0x5d1   :  { %1386 = vsyncpa [#allocation4 + $0x1], 1 }
 0x5d2   :  { %1387 = vsyncpa [#allocation5], 1 }
 0x5d3   :  { %1389 = vsyncpa [#allocation5 + $0x1], 1 }

// kernel: tpu_custom_call.1
= control target key start
LH: loop header
LB: loop body
LE: loop exit
PB: predicated region body
PF: predicated region fallthrough
CT: control target
= control target key end

     0   :  { %13 = vsyncpa [#allocation5], 0  ;;  %s2134_s0 = inlined_call_operand.hbm [shape: f32[2], index: 0, kind: input, shape index: {}]   ;;  %s2135_s1 = inlined_call_operand.vmem [shape: bf16[4,8,32], index: 1, kind: input, shape index: {}]   ;;  %s2136_s2 = inlined_call_operand.vmem [shape: f32[4,8,2], index: 2, kind: input, shape index: {}]   ;;  %s2137_s3 = inlined_call_operand.vmem [shape: f32[4,2,8], index: 3, kind: input, shape index: {}]   ;;  %s2138_s4 = inlined_call_operand.vmem [shape: bf16[32,96], index: 4, kind: input, shape index: {}]   ;;  %s2139_s5 = inlined_call_operand.vmem [shape: f32[1,96], index: 5, kind: input, shape index: {}]   ;;  %s2140_s6 = inlined_call_operand.hbm [shape: bf16[32,32], index: 6, kind: input, shape index: {}]   ;;  %s2141_s7 = inlined_call_operand.vmem [shape: f32[1,32], index: 7, kind: input, shape index: {}]   ;;  %s2142_s8 = inlined_call_operand.hbm [shape: f32[4,8,32], index: 8, kind: output, shape index: {}]  }
   0x1   :  { %14 = vsyncpa [#allocation3], 0 }
   0x2   :  { %15 = vsyncpa [#allocation4], 0 }
   0x3   :  { %17 = vsyncpa [#allocation4 + $0x1], 0  ;;  %s1901_s27 = smov 0   ;;  %s1903_s28 = smov 0  }
   0x4   :  { %s1905_s29 = smov 0   ;;  %s1907_s30 = smov 0  }
   0x5 LB: > { %s1922_s9 = sadd.s32 4294967295, %s1845_s30   ;;  %s1470_s10 = sadd.s32 4294967294, %s1845_s30   ;;  %s1845_s30 = sphi %s1907_s30, %s2151_s30   ;;  %s1841_s29 = sphi %s1905_s29, %s2150_s29   ;;  %s1837_s28 = sphi %s1903_s28, %s2149_s28   ;;  %s1833_s27 = sphi %s1901_s27, %s2148_s27  }
   0x6   : > { %s1926_s11 = sadd.s32 1, %s1845_s30   ;;  %s213_s12 = sadd.s32 1, %s1841_s29 }
   0x7   : > { %s210_s13 = ssub.s32 %s1845_s30, %s1926_s11  ;;  %p223_p0 = scmp.ne.s32.totalorder %s1841_s29, %s1837_s28 }
   0x8   : > { %p211_p1 = scmp.eq.s32.totalorder %s210_s13, 0  ;;  %p224_p2 = scmp.eq.s32.totalorder %s1922_s9, 1 }
   0x9   : > { %p229_p3 = scmp.ne.s32.totalorder %s1837_s28, %s1833_s27  ;;  %p230_p4 = scmp.eq.s32.totalorder %s1470_s10, 1 }
   0xa   : > { %s1937_s14 = scalar_select %p211_p1, %s1841_s29, %s213_s12  }
   0xb   : > { %p1939_p5 = por %p224_p2, %p223_p0  ;;  %p1943_p6 = por %p230_p4, %p229_p3 }
   0xc   : > { %p1471_p7 = scmp.ge.s32.totalorder %s1845_s30, 1  ;;  %p237_p8 = scmp.lt.s32.totalorder %s1845_s30, 3 }
   0xd   : > { %p1556_p9 = scmp.eq.s32.totalorder %s1922_s9, 0  ;;  %s249_s20 = sshll.u32 %s2134_s0, 4  ;;  %s250_s20 = int_to_ptr.hbm [resolvable:$true] %s249_s20 }
   0xe   : > { %p1950_p10 = pnand %p1471_p7, %p237_p8  ;;  %s264_s23 = sshll.u32 %s2140_s6, 4  ;;  %s265_s23 = int_to_ptr.hbm [resolvable:$true] %s264_s23 }
   0xf   : > { %s1847_s24 = smov [#allocation6]   ;;  %s1848_s26 = smov [#allocation2]  }
  0x10   : > { %p1545_p11 = pneg %p1950_p10  ;;  %s266_s25 = sshll.u32 %s1847_s24, 4  ;;  %s267_s25 = int_to_ptr.vmem [resolvable:$true] %s266_s25 }
  0x11   : > { %s1849_s10 = smov 64   ;;  %s1850_s12 = smov 4  }
  0x12   : > { %p1546_p12 = pnand %p1556_p9, %p1545_p11  ;;  %312 = sbr.rel (%p1950_p10) target bundleno = 1472 (0x5c0), region = 52 }
  0x14   : > { %1548 = dma.hbm_to_smem (!%p1546_p12), %s250_s20, 16, %s1848_s26, [#allocation5]  }
  0x15   : > { %1551 = dma.hbm_to_vmem [thread:$0]  (!%p1546_p12), %s265_s23, 256, %s267_s25, [#allocation3], %s1849_s10, %s1849_s10, %s1850_s12  }
  0x17   : > { %1820 = dma.done.wait (%p1556_p9), [#allocation5], 16  }
  0x18   : > { %1822 = vsyncadd (%p1556_p9), [#allocation5], 4294967280 }
  0x19   : > { %1824 = dma.done.wait (%p1556_p9), [#allocation3], 256  }
  0x1a   : > { %1826 = vsyncadd (%p1556_p9), [#allocation3], 4294967040 }
  0x1b   : > { %324 = sfence }
  0x1c   : > { %v1531_v0 = vld [vmem:[%s2138_s4 + $0x8] sm:$0xff]  ;;  %s1479_s17 = sshll.u32 %s1922_s9, 1  ;;  %v1530_v1 = vld [vmem:[%s2138_s4] sm:$0xff]  ;;  %vm468_vm0 = vcmask 261120   ;;  %v1851_v25 = vmov 1   ;;  %v1852_v31 = vmov 0  }
  0x1d   : > { %p364_p13 = scmp.lt.s32.totalorder %s1479_s17, 3  ;;  %478 = vmatpush.bf16.msra.mxu0 %v1531_v0  ;;  %v1696_v4 = vld [vmem:[%s2139_s5] ss:$0 sm:$0xff]  ;;  %vm826_vm1 = vcmask 1043456   ;;  %vm822_vm2 = vcmask 64512   ;;  %s2030_s23 = sld [smem:[#allocation2]] }
  0x1e   : > { %s1534_s12 = sshll.u32 %s1922_s9, 4 }
  0x1f   : > { %s2153_s17 = smov (!%p364_p13, %s1479_s17), 3  ;;  %s1356_s20 = scalar_lea.hbm %s2142_s8, %s1534_s12 }
  0x20   : > { %s1480_s21 = sshll.u32 %s2153_s17, 2  ;;  %s1482_s10 = sshll.u32 %s2153_s17, 3 }
  0x21   : > { %479 = vmatpush.bf16.msra.mxu0 %v1530_v1  ;;  %s367_s24 = scalar_lea.vmem %s2135_s1, %s1480_s21  ;;  %s1996_s18 = scalar_lea.vmem %s2136_s2, %s1482_s10 }
  0x22   : > { %v1529_v2 = vld [vmem:[%s367_s24] sm:$0xff]  ;;  %s1484_s19 = sshll.u32 %s2153_s17, 1  ;;  %s1485_s17 = sld [smem:[#allocation2 + $0x1]] }
  0x23   : > { %v396_v26 = vld [vmem:[%s1996_s18] sm:$0xff]  ;;  %s2027_s22 = scalar_lea.vmem %s2137_s3, %s1484_s19  ;;  %s360_s24 = sand.u32 1, %s1837_s28  }
  0x24   : > { %1498 = vmatmul.msk.bf16.vlgmr.msra.gmra.mxu0 %vm468_vm0, %v1529_v2  ;;  %s1478_s25 = sshll.u32 %s360_s24, 4  ;;  %s1795_s10 = scalar_lea.hbm %s2142_s8, 32 }
  0x25   : > { %s362_s13 = scalar_lea.vmem [#allocation7], %s1478_s25 }
  0x26   : > { %s1357_s21 = sshll.u32 %s362_s13, 4  ;;  %s1358_s21 = int_to_ptr.vmem [resolvable:$true] %s1357_s21 }
  0xa1   : > { %v481_v3 = vpop.f32.mrf.mxu0 }
  0xa2   : > { %v482_v6 = vadd.f32 %v1696_v4, %v481_v3 }
  0xa9   : > { %v483_v5 = vpop.f32.mrf.mxu0 }
  0xaa   : > { %v484_v7 = vadd.f32 %v1696_v4, %v483_v5 }
  0xac   : > { %v1603_v8 = vpack.i.bf16 %v484_v7, %v482_v6 }
  0xae   : > { %1604 = vxpose.xlu0.b32.start.end [1/1] (short) (narrow) %v1603_v8, 96 }
 0x152   : > { %v1605_v9 = vpop.trf.xlu0 }
 0x153   : > { %v1606_v10 = vunpack.i.l.bf16 %v1605_v9  ;;  %v1609_v13 = vunpack.i.h.bf16 %v1605_v9 }
 0x155   : > { %550 = vxpose.xlu1.b32.start.end [1/1] (short) (narrow) %v1606_v10, 8  ;;  %v397_v10 = vld [vmem:[%s1996_s18 + $0x8] sm:$0xff] }
 0x15a   : > { %v1610_v11 = vpop.trf.xlu0 }
 0x15b   : > { %v1614_v12 = vunpack.i.h.bf16 %v1610_v11  ;;  %v1611_v17 = vunpack.i.l.bf16 %v1610_v11  ;;  %v385_v11 = vlaneseq }
 0x15d   : > { %v1672_v14 = vpack.i.bf16 %v1614_v12, %v1609_v13  ;;  %v386_v12 = vshrl.u32 %v385_v11, 7  ;;  %v388_v13 = vand.u32 127, %v385_v11 }
 0x15f   : > { %1673 = vxpose.xlu1.b32.start.end [1/1] (short) (narrow) %v1672_v14, 8  ;;  %v398_v14 = vld [vmem:[%s2027_s22] sm:$0x3] }
 0x162   : > { %v1615_v15 = vpop.trf.xlu0 }
 0x163   : > { %v1616_v16 = vunpack.i.l.bf16 %v1615_v15  ;;  %v1619_v21 = vunpack.i.h.bf16 %v1615_v15  ;;  %v410_v15 = vperm.slane %v398_v14, 0 }
 0x165   : > { %v1665_v18 = vpack.i.bf16 %v1616_v16, %v1611_v17  ;;  %v389_v17 = vsub.s32 %v386_v12, %v388_v13 }
 0x167   : > { %1666 = vxpose.xlu0.b32.start.end [1/1] (short) (narrow) %v1665_v18, 8  ;;  %v422_v18 = vperm.slane %v398_v14, 1  ;;  %vm390_vm3 = vcmp.lt.s32.totalorder %v389_v17, 0 }
 0x16a   : > { %v1620_v19 = vpop.trf.xlu0 }
 0x16b   : > { %v1621_v20 = vunpack.i.l.bf16 %v1620_v19  ;;  %v1624_v43 = vunpack.i.h.bf16 %v1620_v19 }
 0x16d   : > { %646 = vxpose.xlu2.b32.start.end [1/1] (short) (narrow) %v1621_v20, 8 }
 0x172   : > { %v1625_v22 = vpop.trf.xlu0 }
 0x173   : > { %v1626_v30 = vunpack.i.l.bf16 %v1625_v22  ;;  %v1629_v46 = vunpack.i.h.bf16 %v1625_v22 }
 0x175   : > { %742 = vxpose.xlu2.b32.start.end [1/1] (short) (narrow) %v1619_v21, 8  ;;  %v814_v32 = vpack.c.bf16 %v1626_v30, %v1626_v30  ;;  %v818_v48 = vpack.c.bf16 %v1629_v46, %v1629_v46  ;;  %v391_v21 = vsub.s32 0, %v389_v17 }
 0x177   : > { %v828_v33 = vsel %vm826_vm1, %v814_v32, 0  ;;  %v904_v50 = vsel %vm826_vm1, %v818_v48, 0  ;;  %v394_v32 = vstv %s1485_s17 }
 0x178   : > { %837 = vmatpush.bf16.msra.mxu1 %v828_v33 }
 0x17a   : > { %v1630_v23 = vpop.trf.xlu0 }
 0x17b   : > { %v1631_v39 = vunpack.i.l.bf16 %v1630_v23  ;;  %v1634_v47 = vunpack.i.h.bf16 %v1630_v23 }
 0x17d   : > { %v815_v41 = vpack.c.bf16 %v1631_v39, %v1631_v39  ;;  %v819_v49 = vpack.c.bf16 %v1634_v47, %v1634_v47 }
 0x17f   : > { %v847_v44 = vsel %vm826_vm1, %v815_v41, 0  ;;  %v923_v51 = vsel %vm826_vm1, %v819_v49, 0 }
 0x180   : > { %856 = vmatpush.bf16.msra.mxu2 %v847_v44 }
 0x182   : > { %v1635_v24 = vpop.trf.xlu0 }
 0x183   : > { %v1636_v40 = vunpack.i.l.bf16 %v1635_v24  ;;  %v1639_v60 = vunpack.i.h.bf16 %v1635_v24  ;;  %v392_v24 = vsel %vm390_vm3, %v391_v21, %v389_v17 }
 0x184   : > { %913 = vmatpush.bf16.msrb.mxu2 %v904_v50  ;;  %v393_v30 = vcvt.s32.f32 %v392_v24 }
 0x185   : > { %v816_v42 = vpack.c.bf16 %v1636_v40, %v1636_v40  ;;  %v820_v63 = vpack.c.bf16 %v1639_v60, %v1639_v60 }
 0x186   : > { %vm2033_vm5 = vcmp.le.f32.partialorder %v393_v30, %v394_v32 }
 0x187   : > { %v866_v45 = vsel %vm826_vm1, %v816_v42, 0  ;;  %v942_v2 = vsel %vm826_vm1, %v820_v63, 0 }
 0x188   : > { %875 = vmatpush.bf16.msra.mxu3 %v866_v45  ;;  %951 = vmatpush.bf16.msrb.mxu0 %v942_v2 }
 0x18a   : > { %v1640_v27 = vpop.trf.xlu0 }
 0x18b   : > { %v1641_v35 = vunpack.i.l.bf16 %v1640_v27  ;;  %v1644_v3 = vunpack.i.h.bf16 %v1640_v27 }
 0x18c   : > { %932 = vmatpush.bf16.msrb.mxu3 %v923_v51 }
 0x18d   : > { %v817_v36 = vpack.c.bf16 %v1641_v35, %v1641_v35  ;;  %v821_v4 = vpack.c.bf16 %v1644_v3, %v1644_v3  ;;  %v1853_v35 = vmov -1e+30  }
 0x18f   : > { %v885_v37 = vsel %vm826_vm1, %v817_v36, 0  ;;  %v961_v7 = vsel %vm826_vm1, %v821_v4, 0 }
 0x190   : > { %894 = vmatpush.bf16.msrb.mxu1 %v885_v37 }
 0x192   : > { %v1999_v28 = vpop.trf.xlu0 }
 0x19a   : > { %v2001_v29 = vpop.trf.xlu0 }
 0x1a2   : > { %v2004_v34 = vpop.trf.xlu0 }
 0x1aa   : > { %v2007_v38 = vpop.trf.xlu0 }
 0x1b2   : > { %1680 = vset.pattern.permute.xlu1 %v1851_v25 }
 0x1b9   : > { %415 = vperm.xlu1 %1680, %v396_v26  }
 0x1ce   : > { %1681 = vset.pattern.permute.xlu0 %v1852_v31 }
 0x1d5   : > { %407 = vperm.xlu0 %1681, %v397_v10  }
 0x1d7   : > { %1679 = vset.pattern.permute.xlu2 %v1852_v31  ;;  %v432_v31 = vstv %s2030_s23  ;;  %s1345_s23 = scalar_lea.sflag [#allocation4], %s360_s24 }
 0x1de   : > { %402 = vperm.xlu2 %1679, %v396_v26  }
 0x1ee   : > { %774 = vxpose.xlu1.b32.start.end [1/1] (short) (narrow) %v1624_v43, 8 }
 0x1f9   : > { %v566_v52 = vpop.trf.xlu1 }
 0x1fa   : > { %v806_v53 = vpack.c.bf16 %v566_v52, %v566_v52 }
 0x1fc   : > { %1499 = vmatmul.msk.bf16.vlgmr.msra.gmra.mxu1 %vm822_vm2, %v806_v53 }
 0x1fd   : > { %970 = vmatpush.bf16.msra.mxu1 %v961_v7 }
 0x203   : > { %v1674_v54 = vpop.trf.xlu1 }
 0x204   : > { %v1678_v5 = vunpack.i.h.bf16 %v1674_v54  ;;  %v1675_v6 = vunpack.i.l.bf16 %v1674_v54 }
 0x206   : > { %v662_v55 = vpop.trf.xlu2  ;;  %v811_v8 = vpack.c.bf16 %v1678_v5, %v1678_v5  ;;  %v810_v9 = vpack.c.bf16 %v1675_v6, %v1675_v6 }
 0x207   : > { %v809_v56 = vpack.c.bf16 %v662_v55, %v662_v55 }
 0x20b   : > { %v1667_v57 = vpop.trf.xlu0 }
 0x20c   : > { %1502 = vmatmul.msk.bf16.vlgmr.msrb.gmra.mxu1 %vm822_vm2, %v809_v56  ;;  %v1668_v58 = vunpack.i.l.bf16 %v1667_v57  ;;  %v1671_v59 = vunpack.i.h.bf16 %v1667_v57 }
 0x20e   : > { %v807_v61 = vpack.c.bf16 %v1668_v58, %v1668_v58  ;;  %v808_v62 = vpack.c.bf16 %v1671_v59, %v1671_v59  ;;  %v758_v0 = vpop.trf.xlu2 }
 0x20f   : > { %v812_v1 = vpack.c.bf16 %v758_v0, %v758_v0 }
 0x210   : > { %1500 = vmatmul.msk.bf16.vlgmr.msra.gmra.mxu2 %vm822_vm2, %v807_v61  ;;  %1501 = vmatmul.msk.bf16.vlgmr.msra.gmra.mxu3 %vm822_vm2, %v808_v62  ;;  %v399_v62 = vld [vmem:[%s2027_s22 + $0x2] sm:$0x3]  ;;  %s1359_s22 = sshll.u32 %s1356_s20, 4  ;;  %s1360_s22 = int_to_ptr.hbm [resolvable:$true] %s1359_s22 }
 0x211   : > { %1505 = vmatmul.msk.bf16.vlgmr.msrb.gmra.mxu0 %vm822_vm2, %v812_v1  ;;  %v411_v63 = vperm.slane %v399_v62, 0  ;;  %v423_v2 = vperm.slane %v399_v62, 1  ;;  %s1789_s17 = sshra.s32 %s1360_s22, 4  ;;  %s1790_s17 = int_to_ptr.hbm [resolvable:$true] %s1789_s17 }
 0x212   : > { %s1791_s9 = scalar_lea.hbm %s1790_s17, 16  ;;  %p1796_p3 = scmp.lt.s32.totalorder %s1790_s17, %s2142_s8 }
 0x213   : > { %p1792_p0 = scmp.ne.s32.totalorder %s1790_s17, %s1791_s9  ;;  %p1797_p4 = scmp.lt.s32.totalorder %s1795_s10, %s1791_s9 }
 0x215   : > { %p1793_p1 = pnand %p1792_p0, %p1939_p5  ;;  %p1798_p7 = por %p1797_p4, %p1796_p3 }
 0x217   : > { %p1794_p2 = pneg %p1793_p1 }
 0x219   : > { %p1799_p8 = pnand %p1798_p7, %p1794_p2 }
 0x220   : > { %1503 = vmatmul.msk.bf16.vlgmr.msrb.gmra.mxu2 %vm822_vm2, %v810_v9  ;;  %1504 = vmatmul.msk.bf16.vlgmr.msrb.gmra.mxu3 %vm822_vm2, %v811_v8 }
 0x22b   : > { %v416_v19 = vpop.permute.xlu1 %415 }
 0x22c   : > { %v424_v22 = vsub.f32 %v416_v19, %v422_v18 }
 0x22e   : > { %v428_v26 = vmul.f32 %v424_v22, %v424_v22 }
 0x238   : > { %v403_v16 = vpop.permute.xlu2 %402 }
 0x239   : > { %v412_v20 = vsub.f32 %v403_v16, %v410_v15 }
 0x23b   : > { %v426_v23 = vmul.f32 %v412_v20, %v412_v20 }
 0x23d   : > { %v430_v27 = vadd.f32 %v428_v26, %v426_v23 }
 0x23f   : > { %vm433_vm4 = vcmp.le.f32.partialorder %v430_v27, %v432_v31 }
 0x240   : > { %vm437_vm6 = vmand %vm433_vm4, %vm2033_vm5 }
 0x241   : > { %v439_v36 = vsel %vm437_vm6, 0.0, %v1853_v35 }
 0x247   : > { %v408_v0 = vpop.permute.xlu0 %407 }
 0x248   : > { %419 = vperm.xlu1 %1680, %v397_v10   ;;  %v413_v1 = vsub.f32 %v408_v0, %v411_v63  ;;  %v1646_v0 = vunpack.i.l.bf16 %v1999_v28 }
 0x24a   : > { %v427_v4 = vmul.f32 %v413_v1, %v413_v1  ;;  %v1072_v1 = vpack.c.bf16 %v1646_v0, %v1646_v0 }
 0x279   : > { %v839_v37 = vpop.f32.mrf.mxu1 }
 0x27a   : > { %v976_v39 = vadd.f32 %v839_v37, %v439_v36 }
 0x27c   : > { %v984_v40 = vsel %vm822_vm2, %v976_v39, -inf }
 0x27d   : > { %985 = vmax.xlane.f32.xlu2 %v984_v40 }
 0x281   : > { %v841_v41 = vpop.f32.mrf.mxu1 }
 0x289   : > { %v896_v42 = vpop.f32.mrf.mxu1 }
 0x28a   : > { %v979_v52 = vadd.f32 %v896_v42, %v439_v36 }
 0x28c   : > { %v993_v55 = vsel %vm822_vm2, %v979_v52, -inf }
 0x28e   : > { %v953_v58 = vpop.f32.mrf.mxu0 }
 0x291   : > { %v898_v43 = vpop.f32.mrf.mxu1 }
 0x292   : > { %v790_v44 = vpop.trf.xlu1 }
 0x293   : > { %v813_v45 = vpack.c.bf16 %v790_v44, %v790_v44  ;;  %v858_v46 = vpop.f32.mrf.mxu2  ;;  %v877_v47 = vpop.f32.mrf.mxu3 }
 0x294   : > { %v977_v48 = vadd.f32 %v858_v46, %v439_v36  ;;  %v978_v49 = vadd.f32 %v877_v47, %v439_v36 }
 0x295   : > { %1506 = vmatmul.msk.bf16.vlgmr.msra.gmra.mxu1 %vm822_vm2, %v813_v45 }
 0x296   : > { %v987_v50 = vsel %vm822_vm2, %v977_v48, -inf  ;;  %v990_v51 = vsel %vm822_vm2, %v978_v49, -inf  ;;  %v955_v61 = vpop.f32.mrf.mxu0 }
 0x297   : > { %988 = vmax.xlane.f32.xlu1 %v987_v50  ;;  %991 = vmax.xlane.f32.xlu2 %v990_v51 }
 0x29b   : > { %v860_v53 = vpop.f32.mrf.mxu2  ;;  %v879_v54 = vpop.f32.mrf.mxu3 }
 0x29f   : > { %994 = vmax.xlane.f32.xlu1 %v993_v55 }
 0x2a3   : > { %v915_v56 = vpop.f32.mrf.mxu2  ;;  %v934_v57 = vpop.f32.mrf.mxu3 }
 0x2ab   : > { %v917_v59 = vpop.f32.mrf.mxu2  ;;  %v936_v60 = vpop.f32.mrf.mxu3 }
 0x2ba   : > { %v420_v3 = vpop.permute.xlu1 %419 }
 0x2bb   : > { %v425_v5 = vsub.f32 %v420_v3, %v423_v2 }
 0x2bd   : > { %v429_v6 = vmul.f32 %v425_v5, %v425_v5 }
 0x2bf   : > { %v431_v7 = vadd.f32 %v429_v6, %v427_v4 }
 0x2c1   : > { %vm434_vm7 = vcmp.le.f32.partialorder %v431_v7, %v432_v31 }
 0x2c2   : > { %vm438_vm8 = vmand %vm434_vm7, %vm2033_vm5 }
 0x2c3   : > { %v440_v8 = vsel %vm438_vm8, 0.0, %v1853_v35 }
 0x2c4   : > { %v980_v9 = vadd.f32 %v915_v56, %v440_v8  ;;  %v981_v10 = vadd.f32 %v934_v57, %v440_v8  ;;  %v982_v13 = vadd.f32 %v953_v58, %v440_v8 }
 0x2c6   : > { %v999_v11 = vsel %vm822_vm2, %v981_v10, -inf  ;;  %v996_v12 = vsel %vm822_vm2, %v980_v9, -inf  ;;  %v1002_v14 = vsel %vm822_vm2, %v982_v13, -inf }
 0x2c7   : > { %1000 = vmax.xlane.f32.xlu1 %v999_v11  ;;  %997 = vmax.xlane.f32.xlu2 %v996_v12 }
 0x2cf   : > { %1003 = vmax.xlane.f32.xlu2 %v1002_v14  ;;  %v1656_v14 = vunpack.i.l.bf16 %v2004_v34 }
 0x2f0   : > { %v986_v15 = vpop.xlane.xlu2 %985 }
 0x2f1   : > { %v1008_v16 = vsub.f32 %v976_v39, %v986_v15 }
 0x2f3   : > { %v1016_v17 = vmul.f32 1.442695, %v1008_v16 }
 0x2f5   : > { %1698 = vpow2.f32 %v1016_v17 }
 0x2fb   : > { %v1699_v18 = vpop.eup %1698 }
 0x2fc   : > { %v1032_v19 = vsel %vm822_vm2, %v1699_v18, 0.0 }
 0x2fd   : > { %1033 = vadd.xlane.f32.xlu2 %v1032_v19 }
 0x30a   : > { %v992_v20 = vpop.xlane.xlu2 %991  ;;  %v989_v21 = vpop.xlane.xlu1 %988 }
 0x30b   : > { %v1010_v22 = vsub.f32 %v978_v49, %v992_v20  ;;  %v1009_v23 = vsub.f32 %v977_v48, %v989_v21  ;;  %v1651_v20 = vunpack.i.l.bf16 %v2001_v29 }
 0x30d   : > { %v1020_v24 = vmul.f32 1.442695, %v1010_v22  ;;  %v1018_v26 = vmul.f32 1.442695, %v1009_v23  ;;  %v1073_v23 = vpack.c.bf16 %v1651_v20, %v1651_v20 }
 0x30f   : > { %1700 = vpow2.f32 %v1020_v24 }
 0x310   : > { %1702 = vpow2.f32 %v1018_v26 }
 0x312   : > { %v972_v27 = vpop.f32.mrf.mxu1  ;;  %v995_v30 = vpop.xlane.xlu1 %994 }
 0x313   : > { %v983_v31 = vadd.f32 %v972_v27, %v440_v8  ;;  %v1011_v32 = vsub.f32 %v979_v52, %v995_v30  ;;  %v1661_v27 = vunpack.i.l.bf16 %v2007_v38 }
 0x315   : > { %v1701_v33 = vpop.eup %1700  ;;  %v1005_v35 = vsel %vm822_vm2, %v983_v31, -inf  ;;  %v1022_v37 = vmul.f32 1.442695, %v1011_v32  ;;  %v1075_v30 = vpack.c.bf16 %v1661_v27, %v1661_v27 }
 0x316   : > { %1006 = vmax.xlane.f32.xlu1 %v1005_v35  ;;  %v1038_v36 = vsel %vm822_vm2, %v1701_v33, 0.0  ;;  %v1703_v39 = vpop.eup %1702 }
 0x317   : > { %1039 = vadd.xlane.f32.xlu2 %v1038_v36  ;;  %1704 = vpow2.f32 %v1022_v37  ;;  %v1035_v41 = vsel %vm822_vm2, %v1703_v39, 0.0 }
 0x31a   : > { %v974_v40 = vpop.f32.mrf.mxu1 }
 0x31d   : > { %v1705_v42 = vpop.eup %1704 }
 0x31e   : > { %1036 = vadd.xlane.f32.xlu1 %v1035_v41  ;;  %v1041_v43 = vsel %vm822_vm2, %v1705_v42, 0.0 }
 0x326   : > { %1042 = vadd.xlane.f32.xlu1 %v1041_v43 }
 0x33a   : > { %v1001_v44 = vpop.xlane.xlu1 %1000  ;;  %v998_v45 = vpop.xlane.xlu2 %997 }
 0x33b   : > { %v1013_v46 = vsub.f32 %v981_v10, %v1001_v44  ;;  %v1012_v47 = vsub.f32 %v980_v9, %v998_v45  ;;  %v1654_v44 = vunpack.i.h.bf16 %v2001_v29  ;;  %v1649_v45 = vunpack.i.h.bf16 %v1999_v28 }
 0x33d   : > { %v1026_v48 = vmul.f32 1.442695, %v1013_v46  ;;  %v1024_v49 = vmul.f32 1.442695, %v1012_v47 }
 0x33f   : > { %1706 = vpow2.f32 %v1026_v48  ;;  %v1077_v48 = vpack.c.bf16 %v1654_v44, %v1654_v44 }
 0x340   : > { %1708 = vpow2.f32 %v1024_v49  ;;  %v1076_v49 = vpack.c.bf16 %v1649_v45, %v1649_v45 }
 0x342   : > { %v1004_v50 = vpop.xlane.xlu2 %1003 }
 0x343   : > { %v1014_v51 = vsub.f32 %v982_v13, %v1004_v50 }
 0x345   : > { %v2055_v52 = vpop.eup %1706  ;;  %v1028_v53 = vmul.f32 1.442695, %v1014_v51 }
 0x346   : > { %v2057_v54 = vpop.eup %1708  ;;  %v1047_v55 = vsel %vm822_vm2, %v2055_v52, 0.0 }
 0x347   : > { %1710 = vpow2.f32 %v1028_v53  ;;  %1048 = vadd.xlane.f32.xlu1 %v1047_v55  ;;  %v1044_v56 = vsel %vm822_vm2, %v2057_v54, 0.0 }
 0x348   : > { %1045 = vadd.xlane.f32.xlu2 %v1044_v56 }
 0x34d   : > { %v2063_v57 = vpop.eup %1710 }
 0x34e   : > { %v1050_v58 = vsel %vm822_vm2, %v2063_v57, 0.0 }
 0x350   : > { %1051 = vadd.xlane.f32.xlu2 %v1050_v58 }
 0x370   : > { %v1034_v59 = vpop.xlane.xlu2 %1033 }
 0x371   : > { %1712 = vrcp.f32 %v1034_v59  ;;  %v1664_v59 = vunpack.i.h.bf16 %v2007_v38 }
 0x377   : > { %v1713_v60 = vpop.eup %1712 }
 0x378   : > { %v1064_v61 = vmul.f32 %v1713_v60, %v1699_v18  ;;  %v1074_v18 = vpack.c.bf16 %v1656_v14, %v1656_v14  ;;  %v1079_v60 = vpack.c.bf16 %v1664_v59, %v1664_v59  ;;  %v1532_v14 = vld [vmem:[#allocation6] sm:$0xff] }
 0x37a   : > { %v1080_v62 = vpack.c.bf16 %v1064_v61, %v1064_v61 }
 0x37c   : > { %v1092_v63 = vsel %vm822_vm2, %v1080_v62, 0 }
 0x37d   : > { %1101 = vmatpush.bf16.xpose.msra.mxu2 %v1092_v63 }
 0x384   : > { %1507 = vmatmul.msk.bf16.vlgmr.msra.gmra.mxu2 %vm822_vm2, %v1072_v1 }
 0x389   : > { %v1007_v2 = vpop.xlane.xlu1 %1006 }
 0x38a   : > { %v1015_v3 = vsub.f32 %v983_v31, %v1007_v2  ;;  %v1040_v4 = vpop.xlane.xlu2 %1039 }
 0x38b   : > { %1714 = vrcp.f32 %v1040_v4 }
 0x38c   : > { %v1030_v5 = vmul.f32 1.442695, %v1015_v3 }
 0x38e   : > { %1716 = vpow2.f32 %v1030_v5 }
 0x391   : > { %v1715_v6 = vpop.eup %1714  ;;  %v1037_v7 = vpop.xlane.xlu1 %1036 }
 0x392   : > { %1718 = vrcp.f32 %v1037_v7  ;;  %v1066_v8 = vmul.f32 %v1715_v6, %v1701_v33 }
 0x394   : > { %v1717_v9 = vpop.eup %1716  ;;  %v1082_v10 = vpack.c.bf16 %v1066_v8, %v1066_v8 }
 0x395   : > { %v1053_v11 = vsel %vm822_vm2, %v1717_v9, 0.0 }
 0x396   : > { %1054 = vadd.xlane.f32.xlu1 %v1053_v11  ;;  %v1130_v12 = vsel %vm822_vm2, %v1082_v10, 0  ;;  %v1533_v10 = vld [vmem:[#allocation6 + $0x8] sm:$0xff] }
 0x397   : > { %1139 = vmatpush.bf16.xpose.msra.mxu0 %v1130_v12 }
 0x398   : > { %v1719_v13 = vpop.eup %1718 }
 0x399   : > { %v1043_v15 = vpop.xlane.xlu1 %1042  ;;  %v1065_v16 = vmul.f32 %v1719_v13, %v1703_v39 }
 0x39a   : > { %1720 = vrcp.f32 %v1043_v15 }
 0x39b   : > { %v1081_v17 = vpack.c.bf16 %v1065_v16, %v1065_v16 }
 0x39d   : > { %v1111_v19 = vsel %vm822_vm2, %v1081_v17, 0 }
 0x39e   : > { %1120 = vmatpush.bf16.xpose.msra.mxu3 %v1111_v19  ;;  %1509 = vmatmul.msk.bf16.vlgmr.msra.gmra.mxu0 %vm822_vm2, %v1074_v18  ;;  %v1697_v19 = vld [vmem:[%s2141_s7] ss:$0 sm:$0xff] }
 0x3a0   : > { %v1721_v21 = vpop.eup %1720 }
 0x3a1   : > { %v1067_v22 = vmul.f32 %v1721_v21, %v1705_v42 }
 0x3a3   : > { %v1083_v24 = vpack.c.bf16 %v1067_v22, %v1067_v22 }
 0x3a5   : > { %1508 = vmatmul.msk.bf16.vlgmr.msra.gmra.mxu3 %vm822_vm2, %v1073_v23  ;;  %v1149_v26 = vsel %vm822_vm2, %v1083_v24, 0 }
 0x3a6   : > { %1158 = vmatpush.bf16.xpose.msrb.mxu1 %v1149_v26 }
 0x3ad   : > { %1510 = vmatmul.msk.bf16.vlgmr.msrb.gmra.mxu1 %vm822_vm2, %v1075_v30 }
 0x3ba   : > { %v1049_v31 = vpop.xlane.xlu1 %1048 }
 0x3bb   : > { %1722 = vrcp.f32 %v1049_v31  ;;  %v1046_v32 = vpop.xlane.xlu2 %1045 }
 0x3bc   : > { %1724 = vrcp.f32 %v1046_v32 }
 0x3c1   : > { %v1723_v33 = vpop.eup %1722 }
 0x3c2   : > { %v1725_v35 = vpop.eup %1724  ;;  %v1069_v36 = vmul.f32 %v1723_v33, %v2055_v52  ;;  %v1659_v52 = vunpack.i.h.bf16 %v2004_v34 }
 0x3c3   : > { %v1052_v37 = vpop.xlane.xlu2 %1051  ;;  %v1068_v39 = vmul.f32 %v1725_v35, %v2057_v54 }
 0x3c4   : > { %1726 = vrcp.f32 %v1052_v37  ;;  %v1085_v40 = vpack.c.bf16 %v1069_v36, %v1069_v36  ;;  %v1078_v53 = vpack.c.bf16 %v1659_v52, %v1659_v52 }
 0x3c5   : > { %v1084_v41 = vpack.c.bf16 %v1068_v39, %v1068_v39 }
 0x3c6   : > { %v1187_v42 = vsel %vm822_vm2, %v1085_v40, 0 }
 0x3c7   : > { %v1168_v43 = vsel %vm822_vm2, %v1084_v41, 0  ;;  %1196 = vmatpush.bf16.xpose.msrb.mxu3 %v1187_v42 }
 0x3c8   : > { %1177 = vmatpush.bf16.xpose.msrb.mxu2 %v1168_v43 }
 0x3ca   : > { %v1727_v46 = vpop.eup %1726 }
 0x3cb   : > { %v1070_v47 = vmul.f32 %v1727_v46, %v2063_v57 }
 0x3cd   : > { %v1086_v50 = vpack.c.bf16 %v1070_v47, %v1070_v47 }
 0x3ce   : > { %1512 = vmatmul.msk.bf16.vlgmr.msrb.gmra.mxu3 %vm822_vm2, %v1077_v48 }
 0x3cf   : > { %1511 = vmatmul.msk.bf16.vlgmr.msrb.gmra.mxu2 %vm822_vm2, %v1076_v49  ;;  %v1206_v51 = vsel %vm822_vm2, %v1086_v50, 0 }
 0x3d0   : > { %1215 = vmatpush.bf16.xpose.msrb.mxu0 %v1206_v51  ;;  %1334 = vmatpush.bf16.msra.mxu2 %v1533_v10 }
 0x3d4   : > { %1335 = vmatpush.bf16.msra.mxu2 %v1532_v14 }
 0x3d7   : > { %1513 = vmatmul.msk.bf16.vlgmr.msrb.gmra.mxu0 %vm822_vm2, %v1078_v53 }
 0x407   : > { %v1103_v29 = vpop.f32.mrf.mxu2 }
 0x409   : > { %v1055_v28 = vpop.xlane.xlu1 %1054 }
 0x40a   : > { %1728 = vrcp.f32 %v1055_v28 }
 0x40f   : > { %v1105_v54 = vpop.f32.mrf.mxu2 }
 0x410   : > { %v1729_v55 = vpop.eup %1728 }
 0x411   : > { %v1071_v56 = vmul.f32 %v1729_v55, %v1717_v9 }
 0x413   : > { %v1087_v57 = vpack.c.bf16 %v1071_v56, %v1071_v56 }
 0x415   : > { %v1225_v58 = vsel %vm822_vm2, %v1087_v57, 0 }
 0x416   : > { %1234 = vmatpush.bf16.xpose.msra.mxu1 %v1225_v58 }
 0x41b   : > { %v1141_v61 = vpop.f32.mrf.mxu0 }
 0x41d   : > { %1514 = vmatmul.msk.bf16.vlgmr.msra.gmra.mxu1 %vm822_vm2, %v1079_v60 }
 0x423   : > { %v1143_v34 = vpop.f32.mrf.mxu0 }
 0x428   : > { %v1122_v62 = vpop.f32.mrf.mxu3 }
 0x42a   : > { %v1160_v63 = vpop.f32.mrf.mxu1 }
 0x430   : > { %v1124_v0 = vpop.f32.mrf.mxu3 }
 0x432   : > { %v1162_v1 = vpop.f32.mrf.mxu1 }
 0x451   : > { %v1198_v2 = vpop.f32.mrf.mxu3 }
 0x452   : > { %v1179_v3 = vpop.f32.mrf.mxu2  ;;  %v1684_v8 = vpack.i.bf16 %v1198_v2, %v1122_v62 }
 0x453   : > { %v1682_v4 = vpack.i.bf16 %v1179_v3, %v1103_v29 }
 0x454   : > { %v1217_v5 = vpop.f32.mrf.mxu0 }
 0x455   : > { %1683 = vxpose.xlu0.b32.start [1/4] (short) (narrow) %v1682_v4, 8  ;;  %v1686_v38 = vpack.i.bf16 %v1217_v5, %v1141_v61 }
 0x459   : > { %v1200_v6 = vpop.f32.mrf.mxu3 }
 0x45a   : > { %v1181_v7 = vpop.f32.mrf.mxu2 }
 0x45c   : > { %v1219_v9 = vpop.f32.mrf.mxu0 }
 0x45d   : > { %1685 = vxpose.xlu0.b32.cont [2/4] (short) (narrow) %v1684_v8, 8 }
 0x465   : > { %1687 = vxpose.xlu0.b32.cont [3/4] (short) (narrow) %v1686_v38, 8 }
 0x49a   : > { %v1236_v11 = vpop.f32.mrf.mxu1 }
 0x49b   : > { %v1688_v12 = vpack.i.bf16 %v1236_v11, %v1160_v63 }
 0x49d   : > { %1689 = vxpose.xlu0.b32.end [4/4] (short) (narrow) %v1688_v12, 8 }
 0x4a2   : > { %v1238_v13 = vpop.f32.mrf.mxu1 }
 0x504   : > { %1695 = vset.pattern.permute.xlu0 %v1851_v25 }
 0x529   : > { %v1690_v15 = vpop.trf.xlu0 }
 0x52a   : > { %v1694_v16 = vunpack.i.h.bf16 %v1690_v15  ;;  %v1691_v17 = vunpack.i.l.bf16 %v1690_v15 }
 0x52c   : > { %v1304_v18 = vpack.c.bf16 %v1694_v16, %v1691_v17 }
 0x52e   : > { %1523 = vmatmul.msk.bf16.vlgmr.msra.gmra.mxu2 %vm468_vm0, %v1304_v18 }
 0x5b1   : > { %v1337_v20 = vpop.f32.mrf.mxu2 }
 0x5b2   : > { %v1338_v21 = vadd.f32 %v1697_v19, %v1337_v20 }
 0x5b4   : > { %1342 = vst.msk [vmem:[%s362_s13] sm:$0xff] %vm468_vm0, %v1338_v21 }
 0x5b9   : > { %v1339_v25 = vpop.f32.mrf.mxu2 }
 0x5ba   : > { %v1340_v22 = vadd.f32 %v1697_v19, %v1339_v25 }
 0x5bc   : > { %1343 = vst.msk [vmem:[%s362_s13 + $0x8] sm:$0xff] %vm468_vm0, %v1340_v22 }
 0x5bd   : > { %1802 = shalt.err (!%p1799_p8)
}
 0x5be   : > { %s1854_s24 = smov 128   ;;  %s1855_s13 = smov 8  }
 0x5bf   : > { %1543 = dma.vmem_to_hbm [thread:$0]  (%p1939_p5), %s1358_s21, 256, %s1360_s22, %s1345_s23, %s1854_s24, %s1854_s24, %s1855_s13  }
 0x5c0 PF: > { %p1560_p9 = scmp.ge.s32.totalorder %s1845_s30, 2  ;;  %s1374_s19 = sand.u32 1, %s1833_s27  }
 0x5c1   : > { %s1375_s20 = scalar_lea.sflag [#allocation4], %s1374_s19 }
 0x5c2   : > { %p1553_p10 = pnand %p1560_p9, %p1943_p6 }
 0x5c4   : > { %p1554_p11 = pneg %p1553_p10 }
 0x5c6   : > { %1828 = dma.done.wait (%p1554_p11), %s1375_s20, 256  }
 0x5c7   : > { %1830 = vsyncadd (%p1554_p11), %s1375_s20, 4294967040  ;;  %p20_p12 = scmp.ge.s32.totalorder %s1926_s11, 4   ;;  %s2148_s27 = smov %s1837_s28 }
 0x5c8   : > { %s2149_s28 = smov %s1841_s29  ;;  %s2150_s29 = smov %s1937_s14 }
 0x5c9   : > { %s2151_s30 = smov %s1926_s11  ;;  %22 = sbr.rel (!%p20_p12) target bundleno = 5 (0x5), region = 103 }
 0x5ce   :  { %1381 = vsyncpa [#allocation3], 1 }
 0x5cf   :  { %1383 = vsyncpa [#allocation3 + $0x1], 1 }
 0x5d0   :  { %1384 = vsyncpa [#allocation4], 1 }
 0x5d1   :  { %1386 = vsyncpa [#allocation4 + $0x1], 1 }
 0x5d2   :  { %1387 = vsyncpa [#allocation5], 1 }
 0x5d3   :  { %1389 = vsyncpa [#allocation5 + $0x1], 1 }

</bundles_post_ra>
